<compile_context>
chip_gen: v6e
topology: v6e:2x2x1
jax: 0.10.0
libtpu: 0.0.40
codegen_flags: <defaults>
</compile_context>

<pallas_src>
import math

import jax
import jax.numpy as jnp
from jax.experimental import pallas as pl
from jax.experimental.pallas import tpu as pltpu

# ----------------------------- small synthetic config -----------------------------
B, S = 2, 8                      # batch, seq_len
HIDDEN = 32                      # config.hidden_size
N_HEADS = 4                      # config.num_attention_heads
N_KV_HEADS = 2                   # config.num_key_value_heads
HEAD_DIM = HIDDEN // N_HEADS     # 8
Q_DIM = N_HEADS * HEAD_DIM       # 32
KV_DIM = N_KV_HEADS * HEAD_DIM   # 16
FFN = 64                         # config.intermediate_size
N_EXPERTS = 4                    # config.num_local_experts
TOP_K = 2                        # config.num_experts_per_tok (CoSMoE requires 2)
RMS_EPS = 1e-6                   # config.rms_norm_eps
ROPE_THETA = 10000.0             # config.rope_theta
DTYPE = jnp.float32

T = B * S                        # tokens
QKV_W = Q_DIM + Q_DIM + KV_DIM + KV_DIM + KV_DIM   # [q | q_rot | k | k_rot | v] = 112
T_SPLIT = 2                      # token halves for the MoE parallel grid axis (v7x megacore)
T_HALF = T // T_SPLIT
assert T % T_SPLIT == 0 and T_HALF % 8 == 0
assert TOP_K == 2                # z_a / z_b (CoSMoE) are defined for top-2 routing


# =============================== Pallas kernels ====================================
def _ln_qkv_kernel(x_ref, lnw_ref, wqkv_ref, qkv_ref):
    """Fused input RMSNorm + single fused q/q_rot/k/k_rot/v projection matmul."""
    x = x_ref[...].astype(jnp.float32)                        # (T, D)
    var = jnp.mean(x * x, axis=-1, keepdims=True)
    xn = (x * jax.lax.rsqrt(var + RMS_EPS)).astype(x_ref.dtype)
    y = lnw_ref[...] * xn                                     # (T, D)
    qkv_ref[...] = jnp.dot(y, wqkv_ref[...],
                           preferred_element_type=jnp.float32).astype(qkv_ref.dtype)


def _attn_kernel(qkv_ref, cos_ref, sin_ref, wo_ref, res_ref, ln2_ref, gate_ref,
                 h_ref, h2_ref, logits_ref):
    """Per-batch causal attention (GQA) with slab-wide RoPE, fused o-proj + residual,
    fused post-attention RMSNorm + router gate projection."""
    slab = qkv_ref[0].astype(jnp.float32)                     # (S, 112)
    q = slab[:, 0:Q_DIM]
    q_r = slab[:, Q_DIM:2 * Q_DIM]                            # rotate_half folded into weights
    k = slab[:, 2 * Q_DIM:2 * Q_DIM + KV_DIM]
    k_r = slab[:, 2 * Q_DIM + KV_DIM:2 * Q_DIM + 2 * KV_DIM]
    v = slab[:, 2 * Q_DIM + 2 * KV_DIM:QKV_W]
    cos = cos_ref[...]                                        # (S, Q_DIM) f32, head-tiled
    sin = sin_ref[...]

    # Slab-wide RoPE: two FMAs, no per-head rotation / concat (sign folded at prep time).
    q = q * cos + q_r * sin
    k = k * cos[:, :KV_DIM] + k_r * sin[:, :KV_DIM]

    rows = jax.lax.broadcasted_iota(jnp.int32, (S, S), 0)
    cols = jax.lax.broadcasted_iota(jnp.int32, (S, S), 1)
    causal = rows >= cols
    inv_sqrt = 1.0 / math.sqrt(HEAD_DIM)
    n_rep = N_HEADS // N_KV_HEADS

    # TODO(synk): at real sequence lengths convert this to a KV-tiled online-softmax
    # (flash) loop instead of materializing (S, S) scores per head.
    out = jnp.zeros((S, HIDDEN), jnp.float32)
    for h in range(N_HEADS):                                  # static, tiny head count
        kvh = h // n_rep
        qh = q[:, h * HEAD_DIM:(h + 1) * HEAD_DIM]
        kh = k[:, kvh * HEAD_DIM:(kvh + 1) * HEAD_DIM]
        vh = v[:, kvh * HEAD_DIM:(kvh + 1) * HEAD_DIM]
        scores = jax.lax.dot_general(
            qh, kh, (((1,), (1,)), ((), ())), preferred_element_type=jnp.float32
        ) * inv_sqrt                                          # (S, S)
        scores = jnp.where(causal, scores, -1e30)
        m = jnp.max(scores, axis=-1, keepdims=True)
        p = jnp.exp(scores - m)
        p = p / jnp.sum(p, axis=-1, keepdims=True)            # exact softmax normalize
        head = jnp.dot(p, vh, preferred_element_type=jnp.float32)        # (S, hd)
        # Accumulate o-projection per head against a static weight row-slice
        # (no N_HEADS-way lane concatenate through the XLU).
        out = out + jnp.dot(head.astype(wo_ref.dtype),
                            wo_ref[h * HEAD_DIM:(h + 1) * HEAD_DIM, :],
                            preferred_element_type=jnp.float32)

    hidden = res_ref[0].astype(jnp.float32) + out             # fused residual add
    h_ref[0] = hidden.astype(h_ref.dtype)

    # Fused post-attention RMSNorm + router gate projection (slab already in VMEM).
    var = jnp.mean(hidden * hidden, axis=-1, keepdims=True)
    hn = (hidden * jax.lax.rsqrt(var + RMS_EPS)).astype(h_ref.dtype)
    y = ln2_ref[...] * hn                                      # (S, D)
    h2_ref[0] = y
    logits_ref[0] = jnp.dot(y, gate_ref[...],
                            preferred_element_type=jnp.float32).astype(logits_ref.dtype)


def _moe_kernel(h2_ref, res_ref, r_ref, w13_ref, w2_ref, out_ref, cdiag_ref,
                acc_f, acc_a, acc_b):
    """Per-(token-half, expert) SwiGLU + fused MoE combine, CoSMoE accumulators and
    residual add.  Expert axis is a reduction ('arbitrary'); accumulators stay resident
    in VMEM and outputs are written on the last expert iteration.  Dense full-capacity
    compute is numerically identical to the block-sparse gather (unselected weight = 0)."""
    e = pl.program_id(1)

    @pl.when(e == 0)
    def _():
        acc_f[...] = jnp.zeros_like(acc_f)
        acc_a[...] = jnp.zeros_like(acc_a)
        acc_b[...] = jnp.zeros_like(acc_b)

    x = h2_ref[...]                                            # (T_HALF, D)
    # Fused w1||w3 up-projection: one (T_HALF, D) x (D, 2*FFN) matmul, 128-lane-wide.
    h13 = jnp.dot(x, w13_ref[0], preferred_element_type=jnp.float32)     # (T_HALF, 2*FFN)
    h1 = h13[:, :FFN]
    h3 = h13[:, FFN:]
    g = (h1 * jax.nn.sigmoid(h1)) * h3                         # SiLU(w1 x) * (w3 x)
    eo = jnp.dot(g.astype(x.dtype), w2_ref[0],
                 preferred_element_type=jnp.float32)           # (T_HALF, D) expert output

    # Precomputed per-expert routing columns: [combine weight, top-1 mask, top-2 mask].
    r = r_ref[0].astype(jnp.float32)                           # (T_HALF, 3)
    acc_f[...] += r[:, 0:1] * eo                               # weighted combine
    acc_a[...] += r[:, 1:2] * eo                               # z_a: top-1 expert output
    acc_b[...] += r[:, 2:3] * eo                               # z_b: top-2 expert output

    @pl.when(e == pl.num_programs(1) - 1)
    def _():
        out_ref[...] = (res_ref[...].astype(jnp.float32) + acc_f[...]).astype(out_ref.dtype)
        za = acc_a[...]
        zb = acc_b[...]
        za_c = za - jnp.mean(za, axis=-1, keepdims=True)
        zb_c = zb - jnp.mean(zb, axis=-1, keepdims=True)
        std_a = jnp.sqrt(jnp.mean(za_c * za_c, axis=-1, keepdims=True))  # unbiased=False
        std_b = jnp.sqrt(jnp.mean(zb_c * zb_c, axis=-1, keepdims=True))
        cov = jnp.mean(za_c * zb_c, axis=-1, keepdims=True)              # (T_HALF, 1)
        cdiag_ref[...] = cov / (std_a * std_b)                 # exact divide (loss-bearing)


# =============================== kernel wrappers ===================================
def ln_qkv(x2d, lnw, wqkv):
    return pl.pallas_call(
        _ln_qkv_kernel,
        out_shape=jax.ShapeDtypeStruct((T, QKV_W), x2d.dtype),
        grid=(1,),                                            # single step: whole token slab
        in_specs=[
            pl.BlockSpec((T, HIDDEN), lambda i: (0, 0)),
            pl.BlockSpec((1, HIDDEN), lambda i: (0, 0)),
            pl.BlockSpec((HIDDEN, QKV_W), lambda i: (0, 0)),
        ],
        out_specs=pl.BlockSpec((T, QKV_W), lambda i: (0, 0)),
        compiler_params=pltpu.CompilerParams(dimension_semantics=("arbitrary",)),
    )(x2d, lnw, wqkv)


def attention_block(qkv, residual, cos_t, sin_t, wo_t, ln2_w, gate_t):
    spec_qkv = pl.BlockSpec((1, S, QKV_W), lambda b: (b, 0, 0))
    spec_d = pl.BlockSpec((1, S, HIDDEN), lambda b: (b, 0, 0))
    spec_e = pl.BlockSpec((1, S, N_EXPERTS), lambda b: (b, 0, 0))
    return pl.pallas_call(
        _attn_kernel,
        out_shape=(
            jax.ShapeDtypeStruct((B, S, HIDDEN), residual.dtype),     # h (post-attn hidden)
            jax.ShapeDtypeStruct((B, S, HIDDEN), residual.dtype),     # h2 (post-attn RMSNorm)
            jax.ShapeDtypeStruct((B, S, N_EXPERTS), residual.dtype),  # router logits
        ),
        grid=(B,),
        in_specs=[
            spec_qkv,
            pl.BlockSpec((S, Q_DIM), lambda b: (0, 0)),
            pl.BlockSpec((S, Q_DIM), lambda b: (0, 0)),
            pl.BlockSpec((Q_DIM, HIDDEN), lambda b: (0, 0)),
            spec_d,
            pl.BlockSpec((1, HIDDEN), lambda b: (0, 0)),
            pl.BlockSpec((HIDDEN, N_EXPERTS), lambda b: (0, 0)),
        ],
        out_specs=(spec_d, spec_d, spec_e),
        compiler_params=pltpu.CompilerParams(dimension_semantics=("parallel",)),
    )(qkv, cos_t, sin_t, wo_t, residual, ln2_w, gate_t)


def moe_experts(h2, res, routing_e, w13_t, w2_t):
    td_half = pl.BlockSpec((T_HALF, HIDDEN), lambda t, e: (t, 0))
    return pl.pallas_call(
        _moe_kernel,
        out_shape=(
            jax.ShapeDtypeStruct((T, HIDDEN), h2.dtype),
            jax.ShapeDtypeStruct((T, 1), jnp.float32),
        ),
        grid=(T_SPLIT, N_EXPERTS),                            # parallel tokens x reduction experts
        in_specs=[
            td_half,                                                      # h2
            td_half,                                                      # residual
            pl.BlockSpec((1, T_HALF, 3), lambda t, e: (e, t, 0)),         # routing cols / expert
            pl.BlockSpec((1, HIDDEN, 2 * FFN), lambda t, e: (e, 0, 0)),   # w1 || w3
            pl.BlockSpec((1, FFN, HIDDEN), lambda t, e: (e, 0, 0)),       # w2
        ],
        out_specs=(
            td_half,
            pl.BlockSpec((T_HALF, 1), lambda t, e: (t, 0)),
        ),
        scratch_shapes=[
            pltpu.VMEM((T_HALF, HIDDEN), jnp.float32),        # final combine accumulator
            pltpu.VMEM((T_HALF, HIDDEN), jnp.float32),        # z_a accumulator (top-1 expert)
            pltpu.VMEM((T_HALF, HIDDEN), jnp.float32),        # z_b accumulator (top-2 expert)
        ],
        compiler_params=pltpu.CompilerParams(
            dimension_semantics=("parallel", "arbitrary")),
    )(h2, res, routing_e, w13_t, w2_t)


# =============================== JAX glue ==========================================
def _rope_cos_sin(seq_len, head_dim, theta=ROPE_THETA):
    inv_freq = 1.0 / (theta ** (jnp.arange(0, head_dim, 2, dtype=jnp.float32) / head_dim))
    pos = jnp.arange(seq_len, dtype=jnp.float32)
    freqs = jnp.outer(pos, inv_freq)                          # (S, hd/2)
    emb = jnp.concatenate([freqs, freqs], axis=-1)            # (S, hd)
    return jnp.cos(emb), jnp.sin(emb)


def _rotate_half_cols(w_t, n_heads, head_dim):
    """Given an (in, n_heads*hd) projection weight, build the weight whose output equals
    rotate_half(x @ w_t) per head — i.e. fold the rotate_half permutation AND its sign
    into the projection so the kernel applies RoPE with two slab-wide FMAs."""
    hd = head_dim
    cols = []
    for h in range(n_heads):
        blk = w_t[:, h * hd:(h + 1) * hd]
        cols.append(jnp.concatenate([-blk[:, hd // 2:], blk[:, :hd // 2]], axis=-1))
    return jnp.concatenate(cols, axis=-1)


def decoder_layer(x, p):
    # ---- self-attention branch ----
    xf = x.reshape(T, HIDDEN)
    qkv = ln_qkv(xf, p["ln1_w"], p["wqkv_t"]).reshape(B, S, QKV_W)
    h, h2, logits = attention_block(qkv, x, p["rope_cos"], p["rope_sin"],
                                    p["wo_t"], p["ln2_w"], p["gate_t"])
    hf = h.reshape(T, HIDDEN)
    h2f = h2.reshape(T, HIDDEN)
    router_logits = logits.reshape(T, N_EXPERTS)

    # ---- MoE routing (plain JAX; no Pallas top-k) ----
    # TODO(synk): at real token counts replace the dense full-capacity expert loop with
    # PrefetchScalarGridSpec block-sparse routing (tokens sorted by expert).
    probs = jax.nn.softmax(router_logits.astype(jnp.float32), axis=-1)
    top_w, top_idx = jax.lax.top_k(probs, TOP_K)
    top_w = top_w / jnp.sum(top_w, axis=-1, keepdims=True)
    top_w = top_w.astype(hf.dtype)
    oh = jax.nn.one_hot(top_idx, N_EXPERTS, dtype=hf.dtype)   # (T, K, E)
    cw = jnp.einsum("tk,tke->te", top_w, oh)                  # (T, E) combine weight / expert
    m0 = oh[:, 0, :]                                          # top-1 selection mask
    m1 = oh[:, 1, :]                                          # top-2 selection mask
    routing_e = jnp.stack([cw, m0, m1], axis=-1).transpose(1, 0, 2)   # (E, T, 3)

    out, cdiag = moe_experts(h2f, hf, routing_e, p["w13_t"], p["w2_t"])

    c_diag = cdiag.reshape(B, S)
    decorr_loss = jnp.mean(c_diag ** 2)
    outputs = (out.reshape(B, S, HIDDEN),)                    # attn/cache/router flags off
    return outputs, c_diag, decorr_loss


def init_params(key):
    ks = jax.random.split(key, 9)
    scale = 0.05

    def w(k, shape):
        return (scale * jax.random.normal(k, shape, jnp.float32)).astype(DTYPE)

    # torch nn.Linear layout (out_features, in_features)
    return {
        "ln1_w": jnp.ones((HIDDEN,), DTYPE),
        "ln2_w": jnp.ones((HIDDEN,), DTYPE),
        "wq": w(ks[0], (Q_DIM, HIDDEN)),
        "wk": w(ks[1], (KV_DIM, HIDDEN)),
        "wv": w(ks[2], (KV_DIM, HIDDEN)),
        "wo": w(ks[3], (HIDDEN, Q_DIM)),
        "gate": w(ks[4], (N_EXPERTS, HIDDEN)),
        "w1": w(ks[5], (N_EXPERTS, FFN, HIDDEN)),
        "w3": w(ks[6], (N_EXPERTS, FFN, HIDDEN)),
        "w2": w(ks[7], (N_EXPERTS, HIDDEN, FFN)),
    }


def prepare_params(p):
    """One-time weight re-layout: (in, out) orientation, fused QKV(+rot) columns,
    fused w1||w3 expert blocks, and head-tiled RoPE tables."""
    wq_t = p["wq"].T                                          # (D, Q_DIM)
    wk_t = p["wk"].T                                          # (D, KV_DIM)
    wv_t = p["wv"].T                                          # (D, KV_DIM)
    wq_rot = _rotate_half_cols(wq_t, N_HEADS, HEAD_DIM)
    wk_rot = _rotate_half_cols(wk_t, N_KV_HEADS, HEAD_DIM)
    wqkv_t = jnp.concatenate([wq_t, wq_rot, wk_t, wk_rot, wv_t], axis=-1)   # (D, 112)

    w1_t = jnp.transpose(p["w1"], (0, 2, 1))                  # (E, D, FFN)
    w3_t = jnp.transpose(p["w3"], (0, 2, 1))                  # (E, D, FFN)
    w13_t = jnp.concatenate([w1_t, w3_t], axis=-1)            # (E, D, 2*FFN)

    cos, sin = _rope_cos_sin(S, HEAD_DIM)                     # (S, hd)
    return {
        "ln1_w": p["ln1_w"].reshape(1, HIDDEN),
        "ln2_w": p["ln2_w"].reshape(1, HIDDEN),
        "wqkv_t": wqkv_t,
        "wo_t": p["wo"].T,                                    # (Q_DIM, D)
        "gate_t": p["gate"].T,                                # (D, E)
        "w13_t": w13_t,
        "w2_t": jnp.transpose(p["w2"], (0, 2, 1)),            # (E, FFN, D)
        "rope_cos": jnp.tile(cos, (1, N_HEADS)).astype(jnp.float32),   # (S, Q_DIM)
        "rope_sin": jnp.tile(sin, (1, N_HEADS)).astype(jnp.float32),   # (S, Q_DIM)
    }


if __name__ == "__main__":
    key = jax.random.PRNGKey(0)
    kx, kp = jax.random.split(key)
    x = jax.random.normal(kx, (B, S, HIDDEN), DTYPE)
    params = jax.tree_util.tree_map(jax.block_until_ready, prepare_params(init_params(kp)))

    fwd = jax.jit(decoder_layer)
    (outputs, c_diag, decorr_loss) = fwd(x, params)
    hidden_states = outputs[0]

    jax.block_until_ready((hidden_states, c_diag, decorr_loss))
    assert hidden_states.shape == (B, S, HIDDEN)
    assert c_diag.shape == (B, S)
    assert decorr_loss.shape == ()
    print("KERNEL_OK")
</pallas_src>

<mosaic_0001>
module attributes {stable_mosaic.version = 11 : i64} {
  func.func @_ln_qkv_kernel(%arg0: i32, %arg1: memref<16x32xf32, #tpu.memory_space<vmem>>, %arg2: memref<1x32xf32, #tpu.memory_space<vmem>>, %arg3: memref<32x112xf32, #tpu.memory_space<vmem>>, %arg4: memref<16x112xf32, #tpu.memory_space<vmem>>) attributes {dimension_semantics = [#tpu.dimension_semantics<arbitrary>], iteration_bounds = array<i64: 1>, scalar_prefetch = 0 : i64, scratch_operands = 0 : i64, tpu.core_type = #tpu.core_type<tc>, window_params = [{pipeline_mode = #tpu.pipeline_mode<synchronous>, transform_indices = @transform_0, window_bounds = array<i64: 16, 32>}, {pipeline_mode = #tpu.pipeline_mode<synchronous>, transform_indices = @transform_1, window_bounds = array<i64: 1, 32>}, {pipeline_mode = #tpu.pipeline_mode<synchronous>, transform_indices = @transform_2, window_bounds = array<i64: 32, 112>}, {pipeline_mode = #tpu.pipeline_mode<synchronous>, transform_indices = @transform_3, window_bounds = array<i64: 16, 112>}]} {
    %c0 = arith.constant 0 : index
    %c0_0 = arith.constant 0 : index
    %0 = vector.load %arg1[%c0, %c0_0] : memref<16x32xf32, #tpu.memory_space<vmem>>, vector<16x32xf32>
    %1 = arith.mulf %0, %0 : vector<16x32xf32>
    %cst = arith.constant dense<0.000000e+00> : vector<16xf32>
    %2 = vector.multi_reduction <add>, %1, %cst [1] : vector<16x32xf32> to vector<16xf32>
    %3 = vector.shape_cast %2 : vector<16xf32> to vector<16x1xf32>
    %cst_1 = arith.constant 3.200000e+01 : f32
    %4 = vector.broadcast %cst_1 : f32 to vector<16x1xf32>
    %5 = arith.divf %3, %4 : vector<16x1xf32>
    %cst_2 = arith.constant 9.99999997E-7 : f32
    %6 = vector.broadcast %cst_2 : f32 to vector<16x1xf32>
    %7 = arith.addf %5, %6 : vector<16x1xf32>
    %8 = math.rsqrt %7 : vector<16x1xf32>
    %9 = vector.broadcast %8 : vector<16x1xf32> to vector<16x32xf32>
    %10 = arith.mulf %0, %9 : vector<16x32xf32>
    %c0_3 = arith.constant 0 : index
    %c0_4 = arith.constant 0 : index
    %11 = vector.load %arg2[%c0_3, %c0_4] : memref<1x32xf32, #tpu.memory_space<vmem>>, vector<1x32xf32>
    %12 = vector.broadcast %11 : vector<1x32xf32> to vector<16x32xf32>
    %13 = arith.mulf %12, %10 : vector<16x32xf32>
    %c0_5 = arith.constant 0 : index
    %c0_6 = arith.constant 0 : index
    %14 = vector.load %arg3[%c0_5, %c0_6] : memref<32x112xf32, #tpu.memory_space<vmem>>, vector<32x112xf32>
    %cst_7 = arith.constant dense<0.000000e+00> : vector<16x112xf32>
    %15 = tpu.matmul %13, %14, %cst_7 {dimension_numbers = #tpu.dot_dimension_numbers<[1], [0], [0], [1], [0, 0, 1, 1], [], []>} : vector<16x32xf32>, vector<32x112xf32>, vector<16x112xf32> -> vector<16x112xf32>
    %c0_8 = arith.constant 0 : index
    %c0_9 = arith.constant 0 : index
    %16 = vector.load %arg4[%c0_8, %c0_9] : memref<16x112xf32, #tpu.memory_space<vmem>>, vector<16x112xf32>
    tpu.vector_store %arg4[%c0_8, %c0_9], %15 {strides = array<i32>} : memref<16x112xf32, #tpu.memory_space<vmem>>, vector<16x112xf32>,
    return
  }
  func.func @transform_0(%arg0: i32) -> (i32, i32) {
    %c0_i32 = arith.constant 0 : i32
    %c0_i32_0 = arith.constant 0 : i32
    %c0_i32_1 = arith.constant 0 : i32
    return %c0_i32, %c0_i32_0 : i32, i32
  }
  func.func @transform_1(%arg0: i32) -> (i32, i32) {
    %c0_i32 = arith.constant 0 : i32
    %c0_i32_0 = arith.constant 0 : i32
    %c0_i32_1 = arith.constant 0 : i32
    return %c0_i32, %c0_i32_0 : i32, i32
  }
  func.func @transform_2(%arg0: i32) -> (i32, i32) {
    %c0_i32 = arith.constant 0 : i32
    %c0_i32_0 = arith.constant 0 : i32
    %c0_i32_1 = arith.constant 0 : i32
    return %c0_i32, %c0_i32_0 : i32, i32
  }
  func.func @transform_3(%arg0: i32) -> (i32, i32) {
    %c0_i32 = arith.constant 0 : i32
    %c0_i32_0 = arith.constant 0 : i32
    %c0_i32_1 = arith.constant 0 : i32
    return %c0_i32, %c0_i32_0 : i32, i32
  }
}

module attributes {stable_mosaic.version = 11 : i64} {
  func.func @_attn_kernel(%arg0: i32, %arg1: memref<1x8x112xf32, #tpu.memory_space<vmem>>, %arg2: memref<8x32xf32, #tpu.memory_space<vmem>>, %arg3: memref<8x32xf32, #tpu.memory_space<vmem>>, %arg4: memref<32x32xf32, #tpu.memory_space<vmem>>, %arg5: memref<1x8x32xf32, #tpu.memory_space<vmem>>, %arg6: memref<1x32xf32, #tpu.memory_space<vmem>>, %arg7: memref<32x4xf32, #tpu.memory_space<vmem>>, %arg8: memref<1x8x32xf32, #tpu.memory_space<vmem>>, %arg9: memref<1x8x32xf32, #tpu.memory_space<vmem>>, %arg10: memref<1x8x4xf32, #tpu.memory_space<vmem>>) attributes {dimension_semantics = [#tpu.dimension_semantics<parallel>], iteration_bounds = array<i64: 2>, scalar_prefetch = 0 : i64, scratch_operands = 0 : i64, tpu.core_type = #tpu.core_type<tc>, window_params = [{transform_indices = @transform_0, window_bounds = array<i64: 1, 8, 112>}, {pipeline_mode = #tpu.pipeline_mode<synchronous>, transform_indices = @transform_1, window_bounds = array<i64: 8, 32>}, {pipeline_mode = #tpu.pipeline_mode<synchronous>, transform_indices = @transform_2, window_bounds = array<i64: 8, 32>}, {pipeline_mode = #tpu.pipeline_mode<synchronous>, transform_indices = @transform_3, window_bounds = array<i64: 32, 32>}, {transform_indices = @transform_4, window_bounds = array<i64: 1, 8, 32>}, {pipeline_mode = #tpu.pipeline_mode<synchronous>, transform_indices = @transform_5, window_bounds = array<i64: 1, 32>}, {pipeline_mode = #tpu.pipeline_mode<synchronous>, transform_indices = @transform_6, window_bounds = array<i64: 32, 4>}, {transform_indices = @transform_7, window_bounds = array<i64: 1, 8, 32>}, {transform_indices = @transform_8, window_bounds = array<i64: 1, 8, 32>}, {transform_indices = @transform_9, window_bounds = array<i64: 1, 8, 4>}]} {
    %c0 = arith.constant 0 : index
    %c0_0 = arith.constant 0 : index
    %c0_1 = arith.constant 0 : index
    %0 = vector.load %arg1[%c0, %c0_0, %c0_1] : memref<1x8x112xf32, #tpu.memory_space<vmem>>, vector<1x8x112xf32>
    %1 = vector.shape_cast %0 : vector<1x8x112xf32> to vector<8x112xf32>
    %2 = vector.extract_strided_slice %1 {offsets = [0, 0], sizes = [8, 32], strides = [1, 1]} : vector<8x112xf32> to vector<8x32xf32>
    %3 = vector.extract_strided_slice %1 {offsets = [0, 32], sizes = [8, 32], strides = [1, 1]} : vector<8x112xf32> to vector<8x32xf32>
    %4 = vector.extract_strided_slice %1 {offsets = [0, 64], sizes = [8, 16], strides = [1, 1]} : vector<8x112xf32> to vector<8x16xf32>
    %5 = vector.extract_strided_slice %1 {offsets = [0, 80], sizes = [8, 16], strides = [1, 1]} : vector<8x112xf32> to vector<8x16xf32>
    %6 = vector.extract_strided_slice %1 {offsets = [0, 96], sizes = [8, 16], strides = [1, 1]} : vector<8x112xf32> to vector<8x16xf32>
    %c0_2 = arith.constant 0 : index
    %c0_3 = arith.constant 0 : index
    %7 = vector.load %arg2[%c0_2, %c0_3] : memref<8x32xf32, #tpu.memory_space<vmem>>, vector<8x32xf32>
    %c0_4 = arith.constant 0 : index
    %c0_5 = arith.constant 0 : index
    %8 = vector.load %arg3[%c0_4, %c0_5] : memref<8x32xf32, #tpu.memory_space<vmem>>, vector<8x32xf32>
    %9 = arith.mulf %2, %7 : vector<8x32xf32>
    %10 = arith.mulf %3, %8 : vector<8x32xf32>
    %11 = arith.addf %9, %10 : vector<8x32xf32>
    %12 = vector.extract_strided_slice %7 {offsets = [0, 0], sizes = [8, 16], strides = [1, 1]} : vector<8x32xf32> to vector<8x16xf32>
    %13 = arith.mulf %4, %12 : vector<8x16xf32>
    %14 = vector.extract_strided_slice %8 {offsets = [0, 0], sizes = [8, 16], strides = [1, 1]} : vector<8x32xf32> to vector<8x16xf32>
    %15 = arith.mulf %5, %14 : vector<8x16xf32>
    %16 = arith.addf %13, %15 : vector<8x16xf32>
    %17 = tpu.iota {dimensions = array<i32: 0>} : vector<8x8xi32>
    %18 = tpu.iota {dimensions = array<i32: 1>} : vector<8x8xi32>
    %19 = arith.cmpi sge, %17, %18 : vector<8x8xi32>
    %cst = arith.constant 0.000000e+00 : f32
    %20 = vector.broadcast %cst : f32 to vector<8x32xf32>
    %21 = vector.extract_strided_slice %11 {offsets = [0, 0], sizes = [8, 8], strides = [1, 1]} : vector<8x32xf32> to vector<8x8xf32>
    %22 = vector.extract_strided_slice %16 {offsets = [0, 0], sizes = [8, 8], strides = [1, 1]} : vector<8x16xf32> to vector<8x8xf32>
    %23 = vector.extract_strided_slice %6 {offsets = [0, 0], sizes = [8, 8], strides = [1, 1]} : vector<8x16xf32> to vector<8x8xf32>
    %cst_6 = arith.constant dense<0.000000e+00> : vector<8x8xf32>
    %24 = tpu.matmul %21, %22, %cst_6 {dimension_numbers = #tpu.dot_dimension_numbers<[1], [1], [0], [0], [0, 0, 1, 0], [], []>} : vector<8x8xf32>, vector<8x8xf32>, vector<8x8xf32> -> vector<8x8xf32>
    %cst_7 = arith.constant 0.353553385 : f32
    %25 = vector.broadcast %cst_7 : f32 to vector<8x8xf32>
    %26 = arith.mulf %24, %25 : vector<8x8xf32>
    %cst_8 = arith.constant -1.000000e+30 : f32
    %27 = vector.broadcast %cst_8 : f32 to vector<8x8xf32>
    %28 = arith.select %19, %26, %27 : vector<8x8xi1>, vector<8x8xf32>
    %cst_9 = arith.constant dense<0xFF800000> : vector<8xf32>
    %29 = vector.multi_reduction <maximumf>, %28, %cst_9 [1] : vector<8x8xf32> to vector<8xf32>
    %30 = vector.shape_cast %29 : vector<8xf32> to vector<8x1xf32>
    %31 = vector.broadcast %30 : vector<8x1xf32> to vector<8x8xf32>
    %32 = arith.subf %28, %31 : vector<8x8xf32>
    %33 = math.exp %32 : vector<8x8xf32>
    %cst_10 = arith.constant dense<0.000000e+00> : vector<8xf32>
    %34 = vector.multi_reduction <add>, %33, %cst_10 [1] : vector<8x8xf32> to vector<8xf32>
    %35 = vector.shape_cast %34 : vector<8xf32> to vector<8x1xf32>
    %36 = vector.broadcast %35 : vector<8x1xf32> to vector<8x8xf32>
    %37 = arith.divf %33, %36 : vector<8x8xf32>
    %cst_11 = arith.constant dense<0.000000e+00> : vector<8x8xf32>
    %38 = tpu.matmul %37, %23, %cst_11 {dimension_numbers = #tpu.dot_dimension_numbers<[1], [0], [0], [1], [0, 0, 1, 1], [], []>} : vector<8x8xf32>, vector<8x8xf32>, vector<8x8xf32> -> vector<8x8xf32>
    %c0_12 = arith.constant 0 : index
    %c0_13 = arith.constant 0 : index
    %39 = vector.load %arg4[%c0_12, %c0_13] : memref<32x32xf32, #tpu.memory_space<vmem>>, vector<8x32xf32>
    %cst_14 = arith.constant dense<0.000000e+00> : vector<8x32xf32>
    %40 = tpu.matmul %38, %39, %cst_14 {dimension_numbers = #tpu.dot_dimension_numbers<[1], [0], [0], [1], [0, 0, 1, 1], [], []>} : vector<8x8xf32>, vector<8x32xf32>, vector<8x32xf32> -> vector<8x32xf32>
    %41 = arith.addf %20, %40 : vector<8x32xf32>
    %42 = vector.extract_strided_slice %11 {offsets = [0, 8], sizes = [8, 8], strides = [1, 1]} : vector<8x32xf32> to vector<8x8xf32>
    %43 = vector.extract_strided_slice %16 {offsets = [0, 0], sizes = [8, 8], strides = [1, 1]} : vector<8x16xf32> to vector<8x8xf32>
    %44 = vector.extract_strided_slice %6 {offsets = [0, 0], sizes = [8, 8], strides = [1, 1]} : vector<8x16xf32> to vector<8x8xf32>
    %cst_15 = arith.constant dense<0.000000e+00> : vector<8x8xf32>
    %45 = tpu.matmul %42, %43, %cst_15 {dimension_numbers = #tpu.dot_dimension_numbers<[1], [1], [0], [0], [0, 0, 1, 0], [], []>} : vector<8x8xf32>, vector<8x8xf32>, vector<8x8xf32> -> vector<8x8xf32>
    %cst_16 = arith.constant 0.353553385 : f32
    %46 = vector.broadcast %cst_16 : f32 to vector<8x8xf32>
    %47 = arith.mulf %45, %46 : vector<8x8xf32>
    %cst_17 = arith.constant -1.000000e+30 : f32
    %48 = vector.broadcast %cst_17 : f32 to vector<8x8xf32>
    %49 = arith.select %19, %47, %48 : vector<8x8xi1>, vector<8x8xf32>
    %cst_18 = arith.constant dense<0xFF800000> : vector<8xf32>
    %50 = vector.multi_reduction <maximumf>, %49, %cst_18 [1] : vector<8x8xf32> to vector<8xf32>
    %51 = vector.shape_cast %50 : vector<8xf32> to vector<8x1xf32>
    %52 = vector.broadcast %51 : vector<8x1xf32> to vector<8x8xf32>
    %53 = arith.subf %49, %52 : vector<8x8xf32>
    %54 = math.exp %53 : vector<8x8xf32>
    %cst_19 = arith.constant dense<0.000000e+00> : vector<8xf32>
    %55 = vector.multi_reduction <add>, %54, %cst_19 [1] : vector<8x8xf32> to vector<8xf32>
    %56 = vector.shape_cast %55 : vector<8xf32> to vector<8x1xf32>
    %57 = vector.broadcast %56 : vector<8x1xf32> to vector<8x8xf32>
    %58 = arith.divf %54, %57 : vector<8x8xf32>
    %cst_20 = arith.constant dense<0.000000e+00> : vector<8x8xf32>
    %59 = tpu.matmul %58, %44, %cst_20 {dimension_numbers = #tpu.dot_dimension_numbers<[1], [0], [0], [1], [0, 0, 1, 1], [], []>} : vector<8x8xf32>, vector<8x8xf32>, vector<8x8xf32> -> vector<8x8xf32>
    %c8 = arith.constant 8 : index
    %c0_21 = arith.constant 0 : index
    %60 = vector.load %arg4[%c8, %c0_21] : memref<32x32xf32, #tpu.memory_space<vmem>>, vector<8x32xf32>
    %cst_22 = arith.constant dense<0.000000e+00> : vector<8x32xf32>
    %61 = tpu.matmul %59, %60, %cst_22 {dimension_numbers = #tpu.dot_dimension_numbers<[1], [0], [0], [1], [0, 0, 1, 1], [], []>} : vector<8x8xf32>, vector<8x32xf32>, vector<8x32xf32> -> vector<8x32xf32>
    %62 = arith.addf %41, %61 : vector<8x32xf32>
    %63 = vector.extract_strided_slice %11 {offsets = [0, 16], sizes = [8, 8], strides = [1, 1]} : vector<8x32xf32> to vector<8x8xf32>
    %64 = vector.extract_strided_slice %16 {offsets = [0, 8], sizes = [8, 8], strides = [1, 1]} : vector<8x16xf32> to vector<8x8xf32>
    %65 = vector.extract_strided_slice %6 {offsets = [0, 8], sizes = [8, 8], strides = [1, 1]} : vector<8x16xf32> to vector<8x8xf32>
    %cst_23 = arith.constant dense<0.000000e+00> : vector<8x8xf32>
    %66 = tpu.matmul %63, %64, %cst_23 {dimension_numbers = #tpu.dot_dimension_numbers<[1], [1], [0], [0], [0, 0, 1, 0], [], []>} : vector<8x8xf32>, vector<8x8xf32>, vector<8x8xf32> -> vector<8x8xf32>
    %cst_24 = arith.constant 0.353553385 : f32
    %67 = vector.broadcast %cst_24 : f32 to vector<8x8xf32>
    %68 = arith.mulf %66, %67 : vector<8x8xf32>
    %cst_25 = arith.constant -1.000000e+30 : f32
    %69 = vector.broadcast %cst_25 : f32 to vector<8x8xf32>
    %70 = arith.select %19, %68, %69 : vector<8x8xi1>, vector<8x8xf32>
    %cst_26 = arith.constant dense<0xFF800000> : vector<8xf32>
    %71 = vector.multi_reduction <maximumf>, %70, %cst_26 [1] : vector<8x8xf32> to vector<8xf32>
    %72 = vector.shape_cast %71 : vector<8xf32> to vector<8x1xf32>
    %73 = vector.broadcast %72 : vector<8x1xf32> to vector<8x8xf32>
    %74 = arith.subf %70, %73 : vector<8x8xf32>
    %75 = math.exp %74 : vector<8x8xf32>
    %cst_27 = arith.constant dense<0.000000e+00> : vector<8xf32>
    %76 = vector.multi_reduction <add>, %75, %cst_27 [1] : vector<8x8xf32> to vector<8xf32>
    %77 = vector.shape_cast %76 : vector<8xf32> to vector<8x1xf32>
    %78 = vector.broadcast %77 : vector<8x1xf32> to vector<8x8xf32>
    %79 = arith.divf %75, %78 : vector<8x8xf32>
    %cst_28 = arith.constant dense<0.000000e+00> : vector<8x8xf32>
    %80 = tpu.matmul %79, %65, %cst_28 {dimension_numbers = #tpu.dot_dimension_numbers<[1], [0], [0], [1], [0, 0, 1, 1], [], []>} : vector<8x8xf32>, vector<8x8xf32>, vector<8x8xf32> -> vector<8x8xf32>
    %c16 = arith.constant 16 : index
    %c0_29 = arith.constant 0 : index
    %81 = vector.load %arg4[%c16, %c0_29] : memref<32x32xf32, #tpu.memory_space<vmem>>, vector<8x32xf32>
    %cst_30 = arith.constant dense<0.000000e+00> : vector<8x32xf32>
    %82 = tpu.matmul %80, %81, %cst_30 {dimension_numbers = #tpu.dot_dimension_numbers<[1], [0], [0], [1], [0, 0, 1, 1], [], []>} : vector<8x8xf32>, vector<8x32xf32>, vector<8x32xf32> -> vector<8x32xf32>
    %83 = arith.addf %62, %82 : vector<8x32xf32>
    %84 = vector.extract_strided_slice %11 {offsets = [0, 24], sizes = [8, 8], strides = [1, 1]} : vector<8x32xf32> to vector<8x8xf32>
    %85 = vector.extract_strided_slice %16 {offsets = [0, 8], sizes = [8, 8], strides = [1, 1]} : vector<8x16xf32> to vector<8x8xf32>
    %86 = vector.extract_strided_slice %6 {offsets = [0, 8], sizes = [8, 8], strides = [1, 1]} : vector<8x16xf32> to vector<8x8xf32>
    %cst_31 = arith.constant dense<0.000000e+00> : vector<8x8xf32>
    %87 = tpu.matmul %84, %85, %cst_31 {dimension_numbers = #tpu.dot_dimension_numbers<[1], [1], [0], [0], [0, 0, 1, 0], [], []>} : vector<8x8xf32>, vector<8x8xf32>, vector<8x8xf32> -> vector<8x8xf32>
    %cst_32 = arith.constant 0.353553385 : f32
    %88 = vector.broadcast %cst_32 : f32 to vector<8x8xf32>
    %89 = arith.mulf %87, %88 : vector<8x8xf32>
    %cst_33 = arith.constant -1.000000e+30 : f32
    %90 = vector.broadcast %cst_33 : f32 to vector<8x8xf32>
    %91 = arith.select %19, %89, %90 : vector<8x8xi1>, vector<8x8xf32>
    %cst_34 = arith.constant dense<0xFF800000> : vector<8xf32>
    %92 = vector.multi_reduction <maximumf>, %91, %cst_34 [1] : vector<8x8xf32> to vector<8xf32>
    %93 = vector.shape_cast %92 : vector<8xf32> to vector<8x1xf32>
    %94 = vector.broadcast %93 : vector<8x1xf32> to vector<8x8xf32>
    %95 = arith.subf %91, %94 : vector<8x8xf32>
    %96 = math.exp %95 : vector<8x8xf32>
    %cst_35 = arith.constant dense<0.000000e+00> : vector<8xf32>
    %97 = vector.multi_reduction <add>, %96, %cst_35 [1] : vector<8x8xf32> to vector<8xf32>
    %98 = vector.shape_cast %97 : vector<8xf32> to vector<8x1xf32>
    %99 = vector.broadcast %98 : vector<8x1xf32> to vector<8x8xf32>
    %100 = arith.divf %96, %99 : vector<8x8xf32>
    %cst_36 = arith.constant dense<0.000000e+00> : vector<8x8xf32>
    %101 = tpu.matmul %100, %86, %cst_36 {dimension_numbers = #tpu.dot_dimension_numbers<[1], [0], [0], [1], [0, 0, 1, 1], [], []>} : vector<8x8xf32>, vector<8x8xf32>, vector<8x8xf32> -> vector<8x8xf32>
    %c24 = arith.constant 24 : index
    %c0_37 = arith.constant 0 : index
    %102 = vector.load %arg4[%c24, %c0_37] : memref<32x32xf32, #tpu.memory_space<vmem>>, vector<8x32xf32>
    %cst_38 = arith.constant dense<0.000000e+00> : vector<8x32xf32>
    %103 = tpu.matmul %101, %102, %cst_38 {dimension_numbers = #tpu.dot_dimension_numbers<[1], [0], [0], [1], [0, 0, 1, 1], [], []>} : vector<8x8xf32>, vector<8x32xf32>, vector<8x32xf32> -> vector<8x32xf32>
    %104 = arith.addf %83, %103 : vector<8x32xf32>
    %c0_39 = arith.constant 0 : index
    %c0_40 = arith.constant 0 : index
    %c0_41 = arith.constant 0 : index
    %105 = vector.load %arg5[%c0_39, %c0_40, %c0_41] : memref<1x8x32xf32, #tpu.memory_space<vmem>>, vector<1x8x32xf32>
    %106 = vector.shape_cast %105 : vector<1x8x32xf32> to vector<8x32xf32>
    %107 = arith.addf %106, %104 : vector<8x32xf32>
    %c0_42 = arith.constant 0 : index
    %c0_43 = arith.constant 0 : index
    %c0_44 = arith.constant 0 : index
    %108 = vector.load %arg8[%c0_42, %c0_43, %c0_44] : memref<1x8x32xf32, #tpu.memory_space<vmem>>, vector<1x8x32xf32>
    %109 = vector.shape_cast %108 : vector<1x8x32xf32> to vector<8x32xf32>
    %110 = vector.shape_cast %107 : vector<8x32xf32> to vector<1x8x32xf32>
    tpu.vector_store %arg8[%c0_42, %c0_43, %c0_44], %110 {strides = array<i32>} : memref<1x8x32xf32, #tpu.memory_space<vmem>>, vector<1x8x32xf32>,
    %111 = arith.mulf %107, %107 : vector<8x32xf32>
    %cst_45 = arith.constant dense<0.000000e+00> : vector<8xf32>
    %112 = vector.multi_reduction <add>, %111, %cst_45 [1] : vector<8x32xf32> to vector<8xf32>
    %113 = vector.shape_cast %112 : vector<8xf32> to vector<8x1xf32>
    %cst_46 = arith.constant 3.200000e+01 : f32
    %114 = vector.broadcast %cst_46 : f32 to vector<8x1xf32>
    %115 = arith.divf %113, %114 : vector<8x1xf32>
    %cst_47 = arith.constant 9.99999997E-7 : f32
    %116 = vector.broadcast %cst_47 : f32 to vector<8x1xf32>
    %117 = arith.addf %115, %116 : vector<8x1xf32>
    %118 = math.rsqrt %117 : vector<8x1xf32>
    %119 = vector.broadcast %118 : vector<8x1xf32> to vector<8x32xf32>
    %120 = arith.mulf %107, %119 : vector<8x32xf32>
    %c0_48 = arith.constant 0 : index
    %c0_49 = arith.constant 0 : index
    %121 = vector.load %arg6[%c0_48, %c0_49] : memref<1x32xf32, #tpu.memory_space<vmem>>, vector<1x32xf32>
    %122 = vector.broadcast %121 : vector<1x32xf32> to vector<8x32xf32>
    %123 = arith.mulf %122, %120 : vector<8x32xf32>
    %c0_50 = arith.constant 0 : index
    %c0_51 = arith.constant 0 : index
    %c0_52 = arith.constant 0 : index
    %124 = vector.load %arg9[%c0_50, %c0_51, %c0_52] : memref<1x8x32xf32, #tpu.memory_space<vmem>>, vector<1x8x32xf32>
    %125 = vector.shape_cast %124 : vector<1x8x32xf32> to vector<8x32xf32>
    %126 = vector.shape_cast %123 : vector<8x32xf32> to vector<1x8x32xf32>
    tpu.vector_store %arg9[%c0_50, %c0_51, %c0_52], %126 {strides = array<i32>} : memref<1x8x32xf32, #tpu.memory_space<vmem>>, vector<1x8x32xf32>,
    %c0_53 = arith.constant 0 : index
    %c0_54 = arith.constant 0 : index
    %127 = vector.load %arg7[%c0_53, %c0_54] : memref<32x4xf32, #tpu.memory_space<vmem>>, vector<32x4xf32>
    %cst_55 = arith.constant dense<0.000000e+00> : vector<8x4xf32>
    %128 = tpu.matmul %123, %127, %cst_55 {dimension_numbers = #tpu.dot_dimension_numbers<[1], [0], [0], [1], [0, 0, 1, 1], [], []>} : vector<8x32xf32>, vector<32x4xf32>, vector<8x4xf32> -> vector<8x4xf32>
    %c0_56 = arith.constant 0 : index
    %c0_57 = arith.constant 0 : index
    %c0_58 = arith.constant 0 : index
    %129 = vector.load %arg10[%c0_56, %c0_57, %c0_58] : memref<1x8x4xf32, #tpu.memory_space<vmem>>, vector<1x8x4xf32>
    %130 = vector.shape_cast %129 : vector<1x8x4xf32> to vector<8x4xf32>
    %131 = vector.shape_cast %128 : vector<8x4xf32> to vector<1x8x4xf32>
    tpu.vector_store %arg10[%c0_56, %c0_57, %c0_58], %131 {strides = array<i32>} : memref<1x8x4xf32, #tpu.memory_space<vmem>>, vector<1x8x4xf32>,
    return
  }
  func.func @transform_0(%arg0: i32) -> (i32, i32, i32) {
    %c0_i32 = arith.constant 0 : i32
    %c0_i32_0 = arith.constant 0 : i32
    %c0_i32_1 = arith.constant 0 : i32
    return %arg0, %c0_i32, %c0_i32_0 : i32, i32, i32
  }
  func.func @transform_1(%arg0: i32) -> (i32, i32) {
    %c0_i32 = arith.constant 0 : i32
    %c0_i32_0 = arith.constant 0 : i32
    %c0_i32_1 = arith.constant 0 : i32
    return %c0_i32, %c0_i32_0 : i32, i32
  }
  func.func @transform_2(%arg0: i32) -> (i32, i32) {
    %c0_i32 = arith.constant 0 : i32
    %c0_i32_0 = arith.constant 0 : i32
    %c0_i32_1 = arith.constant 0 : i32
    return %c0_i32, %c0_i32_0 : i32, i32
  }
  func.func @transform_3(%arg0: i32) -> (i32, i32) {
    %c0_i32 = arith.constant 0 : i32
    %c0_i32_0 = arith.constant 0 : i32
    %c0_i32_1 = arith.constant 0 : i32
    return %c0_i32, %c0_i32_0 : i32, i32
  }
  func.func @transform_4(%arg0: i32) -> (i32, i32, i32) {
    %c0_i32 = arith.constant 0 : i32
    %c0_i32_0 = arith.constant 0 : i32
    %c0_i32_1 = arith.constant 0 : i32
    return %arg0, %c0_i32, %c0_i32_0 : i32, i32, i32
  }
  func.func @transform_5(%arg0: i32) -> (i32, i32) {
    %c0_i32 = arith.constant 0 : i32
    %c0_i32_0 = arith.constant 0 : i32
    %c0_i32_1 = arith.constant 0 : i32
    return %c0_i32, %c0_i32_0 : i32, i32
  }
  func.func @transform_6(%arg0: i32) -> (i32, i32) {
    %c0_i32 = arith.constant 0 : i32
    %c0_i32_0 = arith.constant 0 : i32
    %c0_i32_1 = arith.constant 0 : i32
    return %c0_i32, %c0_i32_0 : i32, i32
  }
  func.func @transform_7(%arg0: i32) -> (i32, i32, i32) {
    %c0_i32 = arith.constant 0 : i32
    %c0_i32_0 = arith.constant 0 : i32
    %c0_i32_1 = arith.constant 0 : i32
    return %arg0, %c0_i32, %c0_i32_0 : i32, i32, i32
  }
  func.func @transform_8(%arg0: i32) -> (i32, i32, i32) {
    %c0_i32 = arith.constant 0 : i32
    %c0_i32_0 = arith.constant 0 : i32
    %c0_i32_1 = arith.constant 0 : i32
    return %arg0, %c0_i32, %c0_i32_0 : i32, i32, i32
  }
  func.func @transform_9(%arg0: i32) -> (i32, i32, i32) {
    %c0_i32 = arith.constant 0 : i32
    %c0_i32_0 = arith.constant 0 : i32
    %c0_i32_1 = arith.constant 0 : i32
    return %arg0, %c0_i32, %c0_i32_0 : i32, i32, i32
  }
}

module attributes {stable_mosaic.version = 11 : i64} {
  func.func @_moe_kernel(%arg0: i32, %arg1: i32, %arg2: memref<8x32xf32, #tpu.memory_space<vmem>>, %arg3: memref<8x32xf32, #tpu.memory_space<vmem>>, %arg4: memref<1x8x3xf32, #tpu.memory_space<vmem>>, %arg5: memref<1x32x128xf32, #tpu.memory_space<vmem>>, %arg6: memref<1x64x32xf32, #tpu.memory_space<vmem>>, %arg7: memref<8x32xf32, #tpu.memory_space<vmem>>, %arg8: memref<8x1xf32, #tpu.memory_space<vmem>>, %arg9: memref<8x32xf32, #tpu.memory_space<vmem>>, %arg10: memref<8x32xf32, #tpu.memory_space<vmem>>, %arg11: memref<8x32xf32, #tpu.memory_space<vmem>>) attributes {dimension_semantics = [#tpu.dimension_semantics<parallel>, #tpu.dimension_semantics<arbitrary>], iteration_bounds = array<i64: 2, 4>, scalar_prefetch = 0 : i64, scratch_operands = 3 : i64, tpu.core_type = #tpu.core_type<tc>, window_params = [{transform_indices = @transform_0, window_bounds = array<i64: 8, 32>}, {transform_indices = @transform_1, window_bounds = array<i64: 8, 32>}, {transform_indices = @transform_2, window_bounds = array<i64: 1, 8, 3>}, {transform_indices = @transform_3, window_bounds = array<i64: 1, 32, 128>}, {transform_indices = @transform_4, window_bounds = array<i64: 1, 64, 32>}, {transform_indices = @transform_5, window_bounds = array<i64: 8, 32>}, {transform_indices = @transform_6, window_bounds = array<i64: 8, 1>}]} {
    %c0_i32 = arith.constant 0 : i32
    %0 = arith.cmpi eq, %arg1, %c0_i32 : i32
    %1 = arith.extui %0 : i1 to i32
    %c0_i32_0 = arith.constant 0 : i32
    %2 = arith.cmpi ne, %1, %c0_i32_0 : i32
    scf.if %2 {
      %cst_26 = arith.constant 0.000000e+00 : f32
      %42 = vector.broadcast %cst_26 : f32 to vector<8x32xf32>
      %c0_27 = arith.constant 0 : index
      %c0_28 = arith.constant 0 : index
      %43 = vector.load %arg9[%c0_27, %c0_28] : memref<8x32xf32, #tpu.memory_space<vmem>>, vector<8x32xf32>
      tpu.vector_store %arg9[%c0_27, %c0_28], %42 {strides = array<i32>} : memref<8x32xf32, #tpu.memory_space<vmem>>, vector<8x32xf32>,
      %cst_29 = arith.constant 0.000000e+00 : f32
      %44 = vector.broadcast %cst_29 : f32 to vector<8x32xf32>
      %c0_30 = arith.constant 0 : index
      %c0_31 = arith.constant 0 : index
      %45 = vector.load %arg10[%c0_30, %c0_31] : memref<8x32xf32, #tpu.memory_space<vmem>>, vector<8x32xf32>
      tpu.vector_store %arg10[%c0_30, %c0_31], %44 {strides = array<i32>} : memref<8x32xf32, #tpu.memory_space<vmem>>, vector<8x32xf32>,
      %cst_32 = arith.constant 0.000000e+00 : f32
      %46 = vector.broadcast %cst_32 : f32 to vector<8x32xf32>
      %c0_33 = arith.constant 0 : index
      %c0_34 = arith.constant 0 : index
      %47 = vector.load %arg11[%c0_33, %c0_34] : memref<8x32xf32, #tpu.memory_space<vmem>>, vector<8x32xf32>
      tpu.vector_store %arg11[%c0_33, %c0_34], %46 {strides = array<i32>} : memref<8x32xf32, #tpu.memory_space<vmem>>, vector<8x32xf32>,
    } else {
    }
    %c0 = arith.constant 0 : index
    %c0_1 = arith.constant 0 : index
    %3 = vector.load %arg2[%c0, %c0_1] : memref<8x32xf32, #tpu.memory_space<vmem>>, vector<8x32xf32>
    %c0_2 = arith.constant 0 : index
    %c0_3 = arith.constant 0 : index
    %c0_4 = arith.constant 0 : index
    %4 = vector.load %arg5[%c0_2, %c0_3, %c0_4] : memref<1x32x128xf32, #tpu.memory_space<vmem>>, vector<1x32x128xf32>
    %5 = vector.shape_cast %4 : vector<1x32x128xf32> to vector<32x128xf32>
    %cst = arith.constant dense<0.000000e+00> : vector<8x128xf32>
    %6 = tpu.matmul %3, %5, %cst {dimension_numbers = #tpu.dot_dimension_numbers<[1], [0], [0], [1], [0, 0, 1, 1], [], []>} : vector<8x32xf32>, vector<32x128xf32>, vector<8x128xf32> -> vector<8x128xf32>
    %7 = vector.extract_strided_slice %6 {offsets = [0, 0], sizes = [8, 64], strides = [1, 1]} : vector<8x128xf32> to vector<8x64xf32>
    %8 = vector.extract_strided_slice %6 {offsets = [0, 64], sizes = [8, 64], strides = [1, 1]} : vector<8x128xf32> to vector<8x64xf32>
    %9 = arith.negf %7 : vector<8x64xf32>
    %10 = math.exp %9 : vector<8x64xf32>
    %cst_5 = arith.constant 1.000000e+00 : f32
    %11 = vector.broadcast %cst_5 : f32 to vector<8x64xf32>
    %12 = arith.addf %11, %10 : vector<8x64xf32>
    %13 = arith.divf %11, %12 : vector<8x64xf32>
    %14 = arith.mulf %7, %13 : vector<8x64xf32>
    %15 = arith.mulf %14, %8 : vector<8x64xf32>
    %c0_6 = arith.constant 0 : index
    %c0_7 = arith.constant 0 : index
    %c0_8 = arith.constant 0 : index
    %16 = vector.load %arg6[%c0_6, %c0_7, %c0_8] : memref<1x64x32xf32, #tpu.memory_space<vmem>>, vector<1x64x32xf32>
    %17 = vector.shape_cast %16 : vector<1x64x32xf32> to vector<64x32xf32>
    %cst_9 = arith.constant dense<0.000000e+00> : vector<8x32xf32>
    %18 = tpu.matmul %15, %17, %cst_9 {dimension_numbers = #tpu.dot_dimension_numbers<[1], [0], [0], [1], [0, 0, 1, 1], [], []>} : vector<8x64xf32>, vector<64x32xf32>, vector<8x32xf32> -> vector<8x32xf32>
    %c0_10 = arith.constant 0 : index
    %c0_11 = arith.constant 0 : index
    %c0_12 = arith.constant 0 : index
    %19 = vector.load %arg4[%c0_10, %c0_11, %c0_12] : memref<1x8x3xf32, #tpu.memory_space<vmem>>, vector<1x8x3xf32>
    %20 = vector.shape_cast %19 : vector<1x8x3xf32> to vector<8x3xf32>
    %c0_13 = arith.constant 0 : index
    %c0_14 = arith.constant 0 : index
    %21 = vector.load %arg9[%c0_13, %c0_14] : memref<8x32xf32, #tpu.memory_space<vmem>>, vector<8x32xf32>
    %22 = vector.extract_strided_slice %20 {offsets = [0, 0], sizes = [8, 1], strides = [1, 1]} : vector<8x3xf32> to vector<8x1xf32>
    %23 = vector.broadcast %22 : vector<8x1xf32> to vector<8x32xf32>
    %24 = arith.mulf %23, %18 : vector<8x32xf32>
    %25 = arith.addf %21, %24 : vector<8x32xf32>
    %c0_15 = arith.constant 0 : index
    %c0_16 = arith.constant 0 : index
    %26 = vector.load %arg9[%c0_15, %c0_16] : memref<8x32xf32, #tpu.memory_space<vmem>>, vector<8x32xf32>
    tpu.vector_store %arg9[%c0_15, %c0_16], %25 {strides = array<i32>} : memref<8x32xf32, #tpu.memory_space<vmem>>, vector<8x32xf32>,
    %c0_17 = arith.constant 0 : index
    %c0_18 = arith.constant 0 : index
    %27 = vector.load %arg10[%c0_17, %c0_18] : memref<8x32xf32, #tpu.memory_space<vmem>>, vector<8x32xf32>
    %28 = vector.extract_strided_slice %20 {offsets = [0, 1], sizes = [8, 1], strides = [1, 1]} : vector<8x3xf32> to vector<8x1xf32>
    %29 = vector.broadcast %28 : vector<8x1xf32> to vector<8x32xf32>
    %30 = arith.mulf %29, %18 : vector<8x32xf32>
    %31 = arith.addf %27, %30 : vector<8x32xf32>
    %c0_19 = arith.constant 0 : index
    %c0_20 = arith.constant 0 : index
    %32 = vector.load %arg10[%c0_19, %c0_20] : memref<8x32xf32, #tpu.memory_space<vmem>>, vector<8x32xf32>
    tpu.vector_store %arg10[%c0_19, %c0_20], %31 {strides = array<i32>} : memref<8x32xf32, #tpu.memory_space<vmem>>, vector<8x32xf32>,
    %c0_21 = arith.constant 0 : index
    %c0_22 = arith.constant 0 : index
    %33 = vector.load %arg11[%c0_21, %c0_22] : memref<8x32xf32, #tpu.memory_space<vmem>>, vector<8x32xf32>
    %34 = vector.extract_strided_slice %20 {offsets = [0, 2], sizes = [8, 1], strides = [1, 1]} : vector<8x3xf32> to vector<8x1xf32>
    %35 = vector.broadcast %34 : vector<8x1xf32> to vector<8x32xf32>
    %36 = arith.mulf %35, %18 : vector<8x32xf32>
    %37 = arith.addf %33, %36 : vector<8x32xf32>
    %c0_23 = arith.constant 0 : index
    %c0_24 = arith.constant 0 : index
    %38 = vector.load %arg11[%c0_23, %c0_24] : memref<8x32xf32, #tpu.memory_space<vmem>>, vector<8x32xf32>
    tpu.vector_store %arg11[%c0_23, %c0_24], %37 {strides = array<i32>} : memref<8x32xf32, #tpu.memory_space<vmem>>, vector<8x32xf32>,
    %c3_i32 = arith.constant 3 : i32
    %39 = arith.cmpi eq, %arg1, %c3_i32 : i32
    %40 = arith.extui %39 : i1 to i32
    %c0_i32_25 = arith.constant 0 : i32
    %41 = arith.cmpi ne, %40, %c0_i32_25 : i32
    scf.if %41 {
      %c0_26 = arith.constant 0 : index
      %c0_27 = arith.constant 0 : index
      %42 = vector.load %arg3[%c0_26, %c0_27] : memref<8x32xf32, #tpu.memory_space<vmem>>, vector<8x32xf32>
      %c0_28 = arith.constant 0 : index
      %c0_29 = arith.constant 0 : index
      %43 = vector.load %arg9[%c0_28, %c0_29] : memref<8x32xf32, #tpu.memory_space<vmem>>, vector<8x32xf32>
      %44 = arith.addf %42, %43 : vector<8x32xf32>
      %c0_30 = arith.constant 0 : index
      %c0_31 = arith.constant 0 : index
      %45 = vector.load %arg7[%c0_30, %c0_31] : memref<8x32xf32, #tpu.memory_space<vmem>>, vector<8x32xf32>
      tpu.vector_store %arg7[%c0_30, %c0_31], %44 {strides = array<i32>} : memref<8x32xf32, #tpu.memory_space<vmem>>, vector<8x32xf32>,
      %c0_32 = arith.constant 0 : index
      %c0_33 = arith.constant 0 : index
      %46 = vector.load %arg10[%c0_32, %c0_33] : memref<8x32xf32, #tpu.memory_space<vmem>>, vector<8x32xf32>
      %c0_34 = arith.constant 0 : index
      %c0_35 = arith.constant 0 : index
      %47 = vector.load %arg11[%c0_34, %c0_35] : memref<8x32xf32, #tpu.memory_space<vmem>>, vector<8x32xf32>
      %cst_36 = arith.constant dense<0.000000e+00> : vector<8xf32>
      %48 = vector.multi_reduction <add>, %46, %cst_36 [1] : vector<8x32xf32> to vector<8xf32>
      %49 = vector.shape_cast %48 : vector<8xf32> to vector<8x1xf32>
      %cst_37 = arith.constant 3.200000e+01 : f32
      %50 = vector.broadcast %cst_37 : f32 to vector<8x1xf32>
      %51 = arith.divf %49, %50 : vector<8x1xf32>
      %52 = vector.broadcast %51 : vector<8x1xf32> to vector<8x32xf32>
      %53 = arith.subf %46, %52 : vector<8x32xf32>
      %cst_38 = arith.constant dense<0.000000e+00> : vector<8xf32>
      %54 = vector.multi_reduction <add>, %47, %cst_38 [1] : vector<8x32xf32> to vector<8xf32>
      %55 = vector.shape_cast %54 : vector<8xf32> to vector<8x1xf32>
      %cst_39 = arith.constant 3.200000e+01 : f32
      %56 = vector.broadcast %cst_39 : f32 to vector<8x1xf32>
      %57 = arith.divf %55, %56 : vector<8x1xf32>
      %58 = vector.broadcast %57 : vector<8x1xf32> to vector<8x32xf32>
      %59 = arith.subf %47, %58 : vector<8x32xf32>
      %60 = arith.mulf %53, %53 : vector<8x32xf32>
      %cst_40 = arith.constant dense<0.000000e+00> : vector<8xf32>
      %61 = vector.multi_reduction <add>, %60, %cst_40 [1] : vector<8x32xf32> to vector<8xf32>
      %62 = vector.shape_cast %61 : vector<8xf32> to vector<8x1xf32>
      %cst_41 = arith.constant 3.200000e+01 : f32
      %63 = vector.broadcast %cst_41 : f32 to vector<8x1xf32>
      %64 = arith.divf %62, %63 : vector<8x1xf32>
      %65 = math.sqrt %64 : vector<8x1xf32>
      %66 = arith.mulf %59, %59 : vector<8x32xf32>
      %cst_42 = arith.constant dense<0.000000e+00> : vector<8xf32>
      %67 = vector.multi_reduction <add>, %66, %cst_42 [1] : vector<8x32xf32> to vector<8xf32>
      %68 = vector.shape_cast %67 : vector<8xf32> to vector<8x1xf32>
      %cst_43 = arith.constant 3.200000e+01 : f32
      %69 = vector.broadcast %cst_43 : f32 to vector<8x1xf32>
      %70 = arith.divf %68, %69 : vector<8x1xf32>
      %71 = math.sqrt %70 : vector<8x1xf32>
      %72 = arith.mulf %53, %59 : vector<8x32xf32>
      %cst_44 = arith.constant dense<0.000000e+00> : vector<8xf32>
      %73 = vector.multi_reduction <add>, %72, %cst_44 [1] : vector<8x32xf32> to vector<8xf32>
      %74 = vector.shape_cast %73 : vector<8xf32> to vector<8x1xf32>
      %cst_45 = arith.constant 3.200000e+01 : f32
      %75 = vector.broadcast %cst_45 : f32 to vector<8x1xf32>
      %76 = arith.divf %74, %75 : vector<8x1xf32>
      %77 = arith.mulf %65, %71 : vector<8x1xf32>
      %78 = arith.divf %76, %77 : vector<8x1xf32>
      %c0_46 = arith.constant 0 : index
      %c0_47 = arith.constant 0 : index
      %79 = vector.load %arg8[%c0_46, %c0_47] : memref<8x1xf32, #tpu.memory_space<vmem>>, vector<8x1xf32>
      tpu.vector_store %arg8[%c0_46, %c0_47], %78 {strides = array<i32>} : memref<8x1xf32, #tpu.memory_space<vmem>>, vector<8x1xf32>,
    } else {
    }
    return
  }
  func.func @transform_0(%arg0: i32, %arg1: i32) -> (i32, i32) {
    %c0_i32 = arith.constant 0 : i32
    %c0_i32_0 = arith.constant 0 : i32
    return %arg0, %c0_i32 : i32, i32
  }
  func.func @transform_1(%arg0: i32, %arg1: i32) -> (i32, i32) {
    %c0_i32 = arith.constant 0 : i32
    %c0_i32_0 = arith.constant 0 : i32
    return %arg0, %c0_i32 : i32, i32
  }
  func.func @transform_2(%arg0: i32, %arg1: i32) -> (i32, i32, i32) {
    %c0_i32 = arith.constant 0 : i32
    %c0_i32_0 = arith.constant 0 : i32
    return %arg1, %arg0, %c0_i32 : i32, i32, i32
  }
  func.func @transform_3(%arg0: i32, %arg1: i32) -> (i32, i32, i32) {
    %c0_i32 = arith.constant 0 : i32
    %c0_i32_0 = arith.constant 0 : i32
    %c0_i32_1 = arith.constant 0 : i32
    return %arg1, %c0_i32, %c0_i32_0 : i32, i32, i32
  }
  func.func @transform_4(%arg0: i32, %arg1: i32) -> (i32, i32, i32) {
    %c0_i32 = arith.constant 0 : i32
    %c0_i32_0 = arith.constant 0 : i32
    %c0_i32_1 = arith.constant 0 : i32
    return %arg1, %c0_i32, %c0_i32_0 : i32, i32, i32
  }
  func.func @transform_5(%arg0: i32, %arg1: i32) -> (i32, i32) {
    %c0_i32 = arith.constant 0 : i32
    %c0_i32_0 = arith.constant 0 : i32
    return %arg0, %c0_i32 : i32, i32
  }
  func.func @transform_6(%arg0: i32, %arg1: i32) -> (i32, i32) {
    %c0_i32 = arith.constant 0 : i32
    %c0_i32_0 = arith.constant 0 : i32
    return %arg0, %c0_i32 : i32, i32
  }
}

</mosaic_0001>

<bundles_post_ra>
// kernel: sub.5
= control target key start
LH: loop header
LB: loop body
LE: loop exit
PB: predicated region body
PF: predicated region fallthrough
CT: control target
= control target key end

     0   :  { %vm8_vm0 = vcmask 64512   ;;  %vm14_vm1 = vcmask 130112   ;;  %s42_s0 = inlined_call_operand.vmem [shape: f32[2,8], index: 0, kind: input, shape index: {}]   ;;  %s43_s1 = inlined_call_operand.vmem [shape: f32[16], index: 1, kind: output, shape index: {}]  }
   0x1   :  { %v5_v0 = vld [vmem:[%s42_s0] sm:$0x3]  ;;  %s25_s0 = smov 8  }
   0x2   :  { %6 = vst [vmem:[#allocation1] sm:$0x3] %v5_v0 }
   0x9   :  { %v11_v1 = vld [vmem:[#allocation1 + $0x1] sm:$0x1]   ;;  %v7_v2 = vld [vmem:[#allocation1] sm:$0x1]  }
   0xa   :  { %12 = vrot.lane.b32.xlu0 %v11_v1, %s25_s0  ;;  %9 = vst.msk [vmem:[#allocation0] sm:$0x1] %vm8_vm0, %v7_v2  }
  0x7c   :  { %v13_v3 = vpop.permute.xlu0 %12  }
  0x7d   :  { %15 = vst.msk [vmem:[#allocation0] sm:$0x1] %vm14_vm1, %v13_v3  }
  0x84   :  { %v20_v4 = vld [vmem:[#allocation0] sm:$0x1] }
  0x85   :  { %23 = vst [vmem:[%s43_s1] sm:$0x1] %v20_v4 }

// kernel: decoder_layer.3
= control target key start
LH: loop header
LB: loop body
LE: loop exit
PB: predicated region body
PF: predicated region fallthrough
CT: control target
= control target key end

     0   :  { %8 = vsyncpa [#allocation3], 0  ;;  %s199_s12 = smov [#allocation2]   ;;  %s244_s0 = inlined_call_operand.vmem [shape: f32[16,32], index: 0, kind: input, shape index: {}]   ;;  %s245_s1 = inlined_call_operand.vmem [shape: f32[1,32], index: 1, kind: input, shape index: {}]   ;;  %s246_s2 = inlined_call_operand.hbm [shape: f32[32,112], index: 2, kind: input, shape index: {}]   ;;  %s247_s3 = inlined_call_operand.vmem [shape: f32[16,112], index: 3, kind: output, shape index: {}]  }
   0x1   :  { %s18_s13 = sshll.u32 %s199_s12, 4  ;;  %s19_s13 = int_to_ptr.vmem [resolvable:$true] %s18_s13 }
   0x2   :  { %s185_s14 = scalar_lea.vmem %s19_s13, 512  ;;  %p190_p1 = scmp.lt.s32.totalorder %s19_s13, %s19_s13 }
   0x3   :  { %p186_p0 = scmp.ne.s32.totalorder %s19_s13, %s185_s14  ;;  %p191_p2 = scmp.lt.s32.totalorder %s185_s14, %s185_s14 }
   0x5   :  { %p192_p3 = por %p191_p2, %p190_p1 }
   0x7   :  { %p193_p4 = pnand %p192_p3, %p186_p0 }
   0x9   :  { %196 = shalt.err (!%p193_p4)
}
   0xa   :  { %s200_s15 = smov 128   ;;  %s201_s16 = smov 8  }
   0xb   :  { %24 = dma.hbm_to_vmem [thread:$0]  %s246_s2, 512, %s19_s13, [#allocation3], %s200_s15, %s200_s15, %s201_s16  }
   0xc   :  { %197 = dma.done.wait [#allocation3], 512  }
   0xd   :  { %198 = vsyncadd [#allocation3], 4294966784  ;;  %v28_v0 = vld [vmem:[%s244_s0] sm:$0xff]  ;;  %vm32_vm0 = vcmask 261120   ;;  %v29_v1 = vld [vmem:[%s244_s0 + $0x8] sm:$0xff]  ;;  %vm142_vm1 = vcmask 916480  }
   0xe   :  { %v30_v2 = vmul.f32 %v28_v0, %v28_v0  ;;  %v31_v3 = vmul.f32 %v29_v1, %v29_v1  ;;  %v60_v6 = vld [vmem:[#allocation2 + $0x18] sm:$0xff]  ;;  %v59_v7 = vld [vmem:[#allocation2 + $0x10] sm:$0xff]  ;;  %v58_v8 = vld [vmem:[#allocation2 + $0x8] sm:$0xff] }
   0xf   :  { %159 = vmatprep.subr.mxu0 %v60_v6  ;;  %v57_v9 = vld [vmem:[#allocation2] sm:$0xff] }
  0x10   :  { %v33_v4 = vsel %vm32_vm0, %v30_v2, 0.0  ;;  %v36_v5 = vsel %vm32_vm0, %v31_v3, 0.0  ;;  %160 = vmatpush3.msra.mxu0 %v60_v6  ;;  %v150_v17 = vld [vmem:[%s245_s1] ss:$0 sm:$0xff] }
  0x11   :  { %34 = vadd.xlane.f32.xlu0 %v33_v4  ;;  %161 = vmatprep.subr.mxu0 %v59_v7 }
  0x12   :  { %162 = vmatpush3.msra.mxu0 %v59_v7 }
  0x13   :  { %163 = vmatprep.subr.mxu0 %v58_v8 }
  0x14   :  { %164 = vmatpush3.msra.mxu0 %v58_v8 }
  0x15   :  { %37 = vadd.xlane.f32.xlu0 %v36_v5  ;;  %165 = vmatprep.subr.mxu0 %v57_v9 }
  0x16   :  { %166 = vmatpush3.msra.mxu0 %v57_v9 }
  0x9a   :  { %v35_v10 = vpop.xlane.xlu0 %34 }
  0x9b   :  { %v40_v11 = vmul.f32 0.03125, %v35_v10 }
  0x9d   :  { %v42_v12 = vadd.f32 1e-06, %v40_v11 }
  0x9e   :  { %v38_v13 = vpop.xlane.xlu0 %37 }
  0x9f   :  { %173 = vrsqrt.f32 %v42_v12  ;;  %v41_v14 = vmul.f32 0.03125, %v38_v13 }
  0xa1   :  { %v43_v15 = vadd.f32 1e-06, %v41_v14 }
  0xa3   :  { %175 = vrsqrt.f32 %v43_v15 }
  0xac   :  { %v174_v16 = vpop.eup %173 }
  0xad   :  { %v46_v18 = vmul.f32 %v174_v16, %v28_v0 }
  0xaf   :  { %v55_v19 = vmul.f32 %v150_v17, %v46_v18 }
  0xb0   :  { %v176_v20 = vpop.eup %175 }
  0xb1   :  { %v47_v21 = vmul.f32 %v176_v20, %v29_v1  ;;  %167 = vmatprep.mubr.msk.f32.mxu0 %vm32_vm0, %v55_v19 }
  0xb3   :  { %v56_v22 = vmul.f32 %v150_v17, %v47_v21 }
  0xb5   :  { %168 = vmatmul.mubr.msk.f32.vlgmr.msra.gmra.mxu0 %vm32_vm0, %v56_v22 }
 0x175   :  { %v169_v23 = vpop.f32.mrf.mxu0 }
 0x176   :  { %144 = vst.msk [vmem:[%s247_s3 + $0x8] sm:$0xff] %vm142_vm1, %v169_v23 }
 0x177   :  { %v133_v24 = vpop.f32.mrf.mxu0 }
 0x178   :  { %143 = vst.msk [vmem:[%s247_s3] sm:$0xff] %vm142_vm1, %v133_v24 }
 0x179   :  { %149 = vsyncpa [#allocation3], 1 }

// kernel: decoder_layer.4
= control target key start
LH: loop header
LB: loop body
LE: loop exit
PB: predicated region body
PF: predicated region fallthrough
CT: control target
= control target key end

     0   :  { %s1817_s30 = smov 0   ;;  %s1989_s0 = inlined_call_operand.vmem [shape: f32[2,8,112], index: 0, kind: input, shape index: {}]   ;;  %s1990_s1 = inlined_call_operand.vmem [shape: f32[8,32], index: 1, kind: input, shape index: {}]   ;;  %s1991_s2 = inlined_call_operand.vmem [shape: f32[8,32], index: 2, kind: input, shape index: {}]   ;;  %s1992_s3 = inlined_call_operand.vmem [shape: f32[32,32], index: 3, kind: input, shape index: {}]   ;;  %s1993_s4 = inlined_call_operand.vmem [shape: f32[2,8,32], index: 4, kind: input, shape index: {}]   ;;  %s1994_s5 = inlined_call_operand.vmem [shape: f32[1,32], index: 5, kind: input, shape index: {}]   ;;  %s1995_s6 = inlined_call_operand.vmem [shape: f32[32,4], index: 6, kind: input, shape index: {}]   ;;  %s1996_s7 = inlined_call_operand.vmem [shape: f32[2,8,32], index: 7, kind: output, shape index: {0}]   ;;  %s1997_s8 = inlined_call_operand.vmem [shape: f32[2,8,32], index: 8, kind: output, shape index: {1}]   ;;  %s1998_s9 = inlined_call_operand.vmem [shape: f32[2,8,4], index: 9, kind: output, shape index: {2}]  }
   0x1 LB: > { %s1581_s10 = sadd.s32 4294967295, %s1754_s30   ;;  %p1585_p0 = scmp.ge.s32.totalorder %s1754_s30, 1  ;;  %s1754_s30 = sphi %s1817_s30, %s20_s30  }
   0x2   : > { %p300_p1 = scmp.lt.s32.totalorder %s1754_s30, 3 }
   0x4   : > { %p301_p2 = pnand %p1585_p0, %p300_p1 }
   0x5   : > { %s1756_s15 = smov (!%p301_p2), 80   ;;  %s1757_s16 = smov (!%p301_p2), 64  }
   0x6   : > { %304 = sbr.rel (%p301_p2) target bundleno = 2841 (0xb19), region = 48  ;;  %s1758_s17 = smov (!%p301_p2), 32  }
   0x7   : > { %p346_p3 = scmp.lt.s32.totalorder (!%p301_p2), %s1581_s10, 1  ;;  %s1760_s22 = smov (!%p301_p2), 112  }
   0x8   : > { %s1761_s23 = smov (!%p301_p2), 96   ;;  %s1763_s24 = smov (!%p301_p2), 120  }
   0x9   : > { %s1764_s25 = smov (!%p301_p2), 56   ;;  %s1766_s11 = smov (!%p301_p2), 104  }
   0xb   : > { %v368_v0 = vld [vmem:[%s1991_s2] sm:$0xff]  ;;  %s2000_s10 = smov (!%p346_p3, %s1581_s10), 1  ;;  %v1759_v2 = vmov 0.0   ;;  %vm1762_vm0 = vmmov 0   ;;  %vm402_vm1 = vcmask 64512   ;;  %v394_v17 = vlaneseq  ;;  %v729_v48 = vld [vmem:[%s1992_s3 + $0x8] sm:$0xff] }
   0xc   : > { %v367_v1 = vld [vmem:[%s1990_s1] sm:$0xff]  ;;  %385 = vrot.lane.b32.xlu0 %v368_v0, %s1756_s15  ;;  %s1832_s18 = sshll.u32 %s2000_s10, 3  ;;  %1640 = vmatprep.subr.mxu0 %v1759_v2  ;;  %s1765_s10 = smov 24   ;;  %vm1355_vm3 = vcmask 261120   ;;  %vm1452_vm4 = vcmask 31744  }
   0xd   : > { %381 = vrot.lane.b32.xlu1 %v367_v1, %s1757_s16  ;;  %s349_s21 = scalar_lea.vmem %s1989_s0, %s1832_s18  ;;  %1650 = vmatprep.subr.mxu1 %v1759_v2  ;;  %v1865_v18 = vshrl.u32 %v394_v17, 7  ;;  %v1867_v19 = vand.u32 127, %v394_v17  ;;  %v568_v47 = vld [vmem:[%s1992_s3] sm:$0xff]  ;;  %s353_s19 = scalar_lea.vmem %s1993_s4, %s1832_s18 }
   0xe   : > { %v1840_v3 = vld [vmem:[%s349_s21] sm:$0xff]  ;;  %1642 = vmatprep.mubr.msk.f32.mxu0 %vm1762_vm0, %v1759_v2  ;;  %1652 = vmatprep.mubr.msk.f32.mxu1 %vm1762_vm0, %v1759_v2  ;;  %s361_s15 = scalar_lea.vmem %s1997_s8, %s1832_s18 }
   0xf   : > { %v369_v11 = vmul.f32 %v367_v1, %v1840_v3  ;;  %vm398_vm2 = vcmp.ge.s32.totalorder %v1865_v18, %v1867_v19 }
  0x10   : > { %371 = vrot.lane.b32.xlu0 %v368_v0, %s1758_s17 }
  0x7e   : > { %v386_v4 = vpop.permute.xlu0 %385 }
  0x7f   : > { %v388_v5 = vmul.f32 %v386_v4, %v1840_v3  ;;  %v382_v8 = vpop.permute.xlu1 %381 }
  0x80   : > { %v384_v9 = vmul.f32 %v382_v8, %v1840_v3 }
  0x81   : > { %390 = vrot.lane.b32.xlu1 %v388_v5, %s1760_s22 }
  0x82   : > { %v372_v6 = vpop.permute.xlu0 %371 }
  0x83   : > { %v374_v7 = vmul.f32 %v372_v6, %v1840_v3 }
  0x85   : > { %376 = vrot.lane.b32.xlu0 %v374_v7, %s1761_s23 }
  0xf3   : > { %v391_v10 = vpop.permute.xlu1 %390 }
  0xf4   : > { %v393_v12 = vadd.f32 %v391_v10, %v384_v9  ;;  %v1043_v9 = vld [vmem:[%s1992_s3 + $0x10] sm:$0xff] }
  0xf6   : > { %400 = vrot.lane.b32.xlu1 %v393_v12, %s1757_s16 }
  0xf7   : > { %v377_v13 = vpop.permute.xlu0 %376 }
  0xf8   : > { %v1851_v14 = vadd.f32 %v377_v13, %v369_v11 }
  0xfa   : > { %569 = vrot.lane.b32.xlu0 %v1851_v14, %s1763_s24 }
 0x168   : > { %v401_v15 = vpop.permute.xlu1 %400 }
 0x169   : > { %1641 = vmatpush3.xpose.msk.msra.mxu0 %vm402_vm1, %v401_v15  ;;  %1651 = vmatpush3.xpose.msk.msra.mxu1 %vm402_vm1, %v401_v15 }
 0x16a   : > { %1645 = vmatprep.subr.mxu0 %v1759_v2  ;;  %1660 = vmatprep.subr.mxu1 %v1759_v2 }
 0x16c   : > { %v570_v16 = vpop.permute.xlu0 %569  ;;  %1643 = vmatmul.mubr.msk.f32.vlgmr.msra.gmra.mxu0 %vm402_vm1, %v1851_v14 }
 0x16d   : > { %1653 = vmatmul.mubr.msk.f32.vlgmr.msra.gmra.mxu1 %vm402_vm1, %v570_v16  ;;  %1647 = vmatprep.mubr.msk.f32.mxu0 %vm1762_vm0, %v1759_v2 }
 0x16e   : > { %1662 = vmatprep.mubr.msk.f32.mxu1 %vm1762_vm0, %v1759_v2  ;;  %1661 = vmatpush3.msra.mxu1 %v729_v48 }
 0x16f   : > { %1670 = vmatprep.subr.mxu1 %v1759_v2 }
 0x22c   : > { %v474_v20 = vpop.f32.mrf.mxu0 }
 0x22d   : > { %v478_v21 = vmul.f32 0.35355338, %v474_v20  ;;  %v639_v22 = vpop.f32.mrf.mxu1 }
 0x22e   : > { %v643_v23 = vmul.f32 0.35355338, %v639_v22  ;;  %v1644_v24 = vpop.f32.mrf.mxu0 }
 0x22f   : > { %v1654_v25 = vpop.f32.mrf.mxu1  ;;  %v479_v26 = vsel %vm398_vm2, %v478_v21, -1e+30 }
 0x230   : > { %v480_v27 = vsel %vm402_vm1, %v479_v26, -inf  ;;  %v644_v28 = vsel %vm398_vm2, %v643_v23, -1e+30 }
 0x231   : > { %481 = vmax.xlane.f32.xlu1 %v480_v27  ;;  %v645_v29 = vsel %vm402_vm1, %v644_v28, -inf  ;;  %v1278_v27 = vld [vmem:[%s1992_s3 + $0x18] sm:$0xff] }
 0x232   : > { %646 = vmax.xlane.f32.xlu0 %v645_v29 }
 0x2ba   : > { %v482_v30 = vpop.xlane.xlu1 %481 }
 0x2bb   : > { %v483_v31 = vsub.f32 %v479_v26, %v482_v30  ;;  %v647_v32 = vpop.xlane.xlu0 %646 }
 0x2bc   : > { %v648_v33 = vsub.f32 %v644_v28, %v647_v32 }
 0x2bd   : > { %v484_v34 = vmul.f32 1.442695, %v483_v31 }
 0x2be   : > { %v649_v35 = vmul.f32 1.442695, %v648_v33 }
 0x2bf   : > { %1730 = vpow2.f32 %v484_v34 }
 0x2c0   : > { %1732 = vpow2.f32 %v649_v35  ;;  %v1353_v35 = vld [vmem:[%s353_s19] sm:$0xff]  ;;  %s365_s19 = scalar_lea.vmem %s1998_s9, %s1832_s18 }
 0x2cc   : > { %v1731_v36 = vpop.eup %1730 }
 0x2cd   : > { %v1733_v37 = vpop.eup %1732  ;;  %v486_v38 = vsel %vm402_vm1, %v1731_v36, 0.0 }
 0x2ce   : > { %487 = vadd.xlane.f32.xlu0 %v486_v38  ;;  %v651_v39 = vsel %vm402_vm1, %v1733_v37, 0.0 }
 0x2cf   : > { %652 = vadd.xlane.f32.xlu1 %v651_v39 }
 0x2e0   : > { %878 = vrot.lane.b32.xlu1 %v393_v12, %s1764_s25 }
 0x2e4   : > { %876 = vrot.lane.b32.xlu1 %v1851_v14, %s1760_s22  ;;  %492 = vrot.lane.b32.xlu0 %v1840_v3, %s1758_s17  ;;  %s357_s22 = scalar_lea.vmem %s1996_s7, %s1832_s18 }
 0x357   : > { %v488_v40 = vpop.xlane.xlu0 %487 }
 0x358   : > { %1734 = vrcp.f32 %v488_v40  ;;  %v653_v41 = vpop.xlane.xlu1 %652 }
 0x359   : > { %1736 = vrcp.f32 %v653_v41  ;;  %v1378_v41 = vld [vmem:[%s1995_s6 + $0x18] sm:$0xff] }
 0x35b   : > { %v493_v42 = vpop.permute.xlu0 %492 }
 0x35c   : > { %1646 = vmatpush3.msra.mxu0 %v493_v42  ;;  %v879_v50 = vpop.permute.xlu1 %878 }
 0x35d   : > { %1655 = vmatprep.subr.mxu0 %v1759_v2 }
 0x360   : > { %v877_v54 = vpop.permute.xlu1 %876 }
 0x365   : > { %v1735_v43 = vpop.eup %1734 }
 0x366   : > { %v490_v44 = vmul.f32 %v1735_v43, %v1731_v36  ;;  %v1737_v45 = vpop.eup %1736  ;;  %v1376_v43 = vld [vmem:[%s1995_s6 + $0x8] sm:$0xff] }
 0x367   : > { %v655_v46 = vmul.f32 %v1737_v45, %v1733_v37 }
 0x368   : > { %1648 = vmatmul.mubr.msk.f32.vlgmr.msra.gmra.mxu0 %vm402_vm1, %v490_v44  ;;  %v1375_v44 = vld [vmem:[%s1995_s6] sm:$0xff] }
 0x369   : > { %1656 = vmatpush3.msra.mxu0 %v493_v42  ;;  %1657 = vmatprep.mubr.msk.f32.mxu0 %vm1762_vm0, %v1759_v2  ;;  %v1377_v42 = vld [vmem:[%s1995_s6 + $0x10] sm:$0xff] }
 0x36a   : > { %1665 = vmatprep.subr.mxu0 %v1759_v2 }
 0x36c   : > { %1658 = vmatmul.mubr.msk.f32.vlgmr.msra.gmra.mxu0 %vm402_vm1, %v655_v46 }
 0x36d   : > { %1667 = vmatprep.mubr.msk.f32.mxu0 %vm1762_vm0, %v1759_v2  ;;  %1666 = vmatpush3.msra.mxu0 %v568_v47 }
 0x36e   : > { %1675 = vmatprep.subr.mxu0 %v1759_v2 }
 0x428   : > { %v564_v49 = vpop.f32.mrf.mxu0 }
 0x429   : > { %1668 = vmatmul.mubr.msk.f32.vlgmr.msra.gmra.mxu0 %vm402_vm1, %v564_v49  ;;  %v1607_v49 = vld [vmem:[%s1994_s5] ss:$0 sm:$0xff] }
 0x42a   : > { %v1649_v51 = vpop.f32.mrf.mxu0  ;;  %1677 = vmatprep.mubr.msk.f32.mxu0 %vm1762_vm0, %v1759_v2 }
 0x42c   : > { %v725_v52 = vpop.f32.mrf.mxu0 }
 0x42d   : > { %1663 = vmatmul.mubr.msk.f32.vlgmr.msra.gmra.mxu1 %vm402_vm1, %v725_v52 }
 0x42e   : > { %1671 = vmatpush3.xpose.msk.msra.mxu1 %vm402_vm1, %v879_v50  ;;  %v1659_v53 = vpop.f32.mrf.mxu0  ;;  %1672 = vmatprep.mubr.msk.f32.mxu1 %vm1762_vm0, %v1759_v2 }
 0x42f   : > { %1680 = vmatprep.subr.mxu1 %v1759_v2 }
 0x431   : > { %1673 = vmatmul.mubr.msk.f32.vlgmr.msra.gmra.mxu1 %vm402_vm1, %v877_v54 }
 0x432   : > { %1682 = vmatprep.mubr.msk.f32.mxu1 %vm1762_vm0, %v1759_v2  ;;  %1681 = vmatpush3.msra.mxu1 %v1043_v9 }
 0x433   : > { %1690 = vmatprep.subr.mxu1 %v1759_v2 }
 0x4e9   : > { %v872_v55 = vpop.f32.mrf.mxu0 }
 0x4eb   : > { %v1669_v56 = vpop.f32.mrf.mxu0 }
 0x4ed   : > { %v799_v57 = vpop.f32.mrf.mxu1 }
 0x4ee   : > { %v873_v58 = vadd.f32 %v872_v55, %v799_v57 }
 0x4ef   : > { %v1664_v59 = vpop.f32.mrf.mxu1 }
 0x4f1   : > { %v950_v60 = vpop.f32.mrf.mxu1 }
 0x4f2   : > { %v954_v61 = vmul.f32 0.35355338, %v950_v60 }
 0x4f3   : > { %v1674_v62 = vpop.f32.mrf.mxu1 }
 0x4f4   : > { %v955_v63 = vsel %vm398_vm2, %v954_v61, -1e+30 }
 0x4f5   : > { %v956_v0 = vsel %vm402_vm1, %v955_v63, -inf }
 0x4f6   : > { %957 = vmax.xlane.f32.xlu0 %v956_v0 }
 0x50c   : > { %967 = vrot.lane.b32.xlu0 %v1840_v3, %s1765_s10 }
 0x57f   : > { %v958_v1 = vpop.xlane.xlu0 %957 }
 0x580   : > { %v959_v4 = vsub.f32 %v955_v63, %v958_v1 }
 0x582   : > { %v960_v5 = vmul.f32 1.442695, %v959_v4 }
 0x583   : > { %v968_v8 = vpop.permute.xlu0 %967 }
 0x584   : > { %1738 = vpow2.f32 %v960_v5  ;;  %1676 = vmatpush3.msra.mxu0 %v968_v8 }
 0x585   : > { %1685 = vmatprep.subr.mxu0 %v1759_v2 }
 0x591   : > { %v1739_v6 = vpop.eup %1738 }
 0x592   : > { %v962_v7 = vsel %vm402_vm1, %v1739_v6, 0.0 }
 0x593   : > { %963 = vadd.xlane.f32.xlu1 %v962_v7 }
 0x5a4   : > { %1118 = vrot.lane.b32.xlu1 %v1851_v14, %s1766_s11 }
 0x61c   : > { %v964_v3 = vpop.xlane.xlu1 %963 }
 0x61d   : > { %1740 = vrcp.f32 %v964_v3 }
 0x620   : > { %v1119_v12 = vpop.permute.xlu1 %1118 }
 0x62a   : > { %v1741_v10 = vpop.eup %1740 }
 0x62b   : > { %v966_v11 = vmul.f32 %v1741_v10, %v1739_v6 }
 0x62d   : > { %1678 = vmatmul.mubr.msk.f32.vlgmr.msra.gmra.mxu0 %vm402_vm1, %v966_v11 }
 0x62e   : > { %1686 = vmatpush3.xpose.msk.msra.mxu0 %vm402_vm1, %v879_v50  ;;  %1687 = vmatprep.mubr.msk.f32.mxu0 %vm1762_vm0, %v1759_v2 }
 0x62f   : > { %1695 = vmatprep.subr.mxu0 %v1759_v2 }
 0x631   : > { %1688 = vmatmul.mubr.msk.f32.vlgmr.msra.gmra.mxu0 %vm402_vm1, %v1119_v12 }
 0x632   : > { %1697 = vmatprep.mubr.msk.f32.mxu0 %vm1762_vm0, %v1759_v2  ;;  %1696 = vmatpush3.msra.mxu0 %v1278_v27 }
 0x6ed   : > { %v1039_v13 = vpop.f32.mrf.mxu0 }
 0x6ee   : > { %1683 = vmatmul.mubr.msk.f32.vlgmr.msra.gmra.mxu1 %vm402_vm1, %v1039_v13 }
 0x6ef   : > { %1691 = vmatpush3.msra.mxu1 %v968_v8  ;;  %v1679_v14 = vpop.f32.mrf.mxu0  ;;  %1692 = vmatprep.mubr.msk.f32.mxu1 %vm1762_vm0, %v1759_v2 }
 0x6f0   : > { %1700 = vmatprep.subr.mxu1 %v1759_v2 }
 0x6f1   : > { %v1188_v15 = vpop.f32.mrf.mxu0 }
 0x6f2   : > { %v1192_v16 = vmul.f32 0.35355338, %v1188_v15 }
 0x6f3   : > { %v1689_v17 = vpop.f32.mrf.mxu0 }
 0x6f4   : > { %v1193_v20 = vsel %vm398_vm2, %v1192_v16, -1e+30 }
 0x6f5   : > { %v1194_v21 = vsel %vm402_vm1, %v1193_v20, -inf }
 0x6f6   : > { %1195 = vmax.xlane.f32.xlu0 %v1194_v21 }
 0x77f   : > { %v1196_v22 = vpop.xlane.xlu0 %1195 }
 0x780   : > { %v1197_v23 = vsub.f32 %v1193_v20, %v1196_v22 }
 0x782   : > { %v1198_v24 = vmul.f32 1.442695, %v1197_v23 }
 0x784   : > { %1742 = vpow2.f32 %v1198_v24 }
 0x791   : > { %v1743_v25 = vpop.eup %1742 }
 0x792   : > { %v1200_v26 = vsel %vm402_vm1, %v1743_v25, 0.0 }
 0x793   : > { %1201 = vadd.xlane.f32.xlu1 %v1200_v26 }
 0x7ae   : > { %v1113_v28 = vpop.f32.mrf.mxu1 }
 0x7af   : > { %v1117_v18 = vadd.f32 %v1113_v28, %v873_v58 }
 0x7b0   : > { %v1684_v19 = vpop.f32.mrf.mxu1 }
 0x81c   : > { %v1202_v29 = vpop.xlane.xlu1 %1201 }
 0x81d   : > { %1744 = vrcp.f32 %v1202_v29 }
 0x82a   : > { %v1745_v30 = vpop.eup %1744 }
 0x82b   : > { %v1204_v31 = vmul.f32 %v1745_v30, %v1743_v25 }
 0x82d   : > { %1693 = vmatmul.mubr.msk.f32.vlgmr.msra.gmra.mxu1 %vm402_vm1, %v1204_v31 }
 0x82e   : > { %1708 = vmatprep.mubr.msk.f32.mxu1 %vm1762_vm0, %v1759_v2  ;;  %1701 = vmatpush3.msra.mxu1 %v1378_v41 }
 0x82f   : > { %1702 = vmatprep.subr.mxu1 %v1759_v2 }
 0x830   : > { %1703 = vmatpush3.msra.mxu1 %v1377_v42 }
 0x831   : > { %1704 = vmatprep.subr.mxu1 %v1759_v2 }
 0x832   : > { %1705 = vmatpush3.msra.mxu1 %v1376_v43 }
 0x833   : > { %1706 = vmatprep.subr.mxu1 %v1759_v2 }
 0x834   : > { %1707 = vmatpush3.msra.mxu1 %v1375_v44 }
 0x8ed   : > { %v1274_v32 = vpop.f32.mrf.mxu1 }
 0x8ee   : > { %1698 = vmatmul.mubr.msk.f32.vlgmr.msra.gmra.mxu0 %vm402_vm1, %v1274_v32 }
 0x8ef   : > { %v1694_v33 = vpop.f32.mrf.mxu1 }
 0x9ae   : > { %v1348_v34 = vpop.f32.mrf.mxu0 }
 0x9af   : > { %v1352_v36 = vadd.f32 %v1348_v34, %v1117_v18 }
 0x9b0   : > { %v1699_v37 = vpop.f32.mrf.mxu0 }
 0x9b1   : > { %v1354_v38 = vadd.f32 %v1353_v35, %v1352_v36 }
 0x9b3   : > { %v1357_v39 = vmul.f32 %v1354_v38, %v1354_v38  ;;  %1356 = vst.msk [vmem:[%s357_s22] sm:$0xff] %vm1355_vm3, %v1354_v38 }
 0x9b5   : > { %v1358_v40 = vsel %vm1355_vm3, %v1357_v39, 0.0 }
 0x9b6   : > { %1359 = vadd.xlane.f32.xlu0 %v1358_v40 }
 0xa3f   : > { %v1360_v45 = vpop.xlane.xlu0 %1359 }
 0xa40   : > { %v1362_v46 = vmul.f32 0.03125, %v1360_v45 }
 0xa42   : > { %v1363_v47 = vadd.f32 1e-06, %v1362_v46 }
 0xa44   : > { %1746 = vrsqrt.f32 %v1363_v47 }
 0xa51   : > { %v1747_v48 = vpop.eup %1746 }
 0xa52   : > { %v1365_v50 = vmul.f32 %v1747_v48, %v1354_v38 }
 0xa54   : > { %v1373_v51 = vmul.f32 %v1607_v49, %v1365_v50 }
 0xa56   : > { %1374 = vst.msk [vmem:[%s361_s15] sm:$0xff] %vm1355_vm3, %v1373_v51  ;;  %1709 = vmatmul.mubr.msk.f32.vlgmr.msra.gmra.mxu1 %vm1355_vm3, %v1373_v51 }
 0xb16   : > { %v1448_v2 = vpop.f32.mrf.mxu1 }
 0xb17   : > { %1453 = vst.msk [vmem:[%s365_s19] sm:$0xff] %vm1452_vm4, %v1448_v2 }
 0xb18   : > { %v1710_v52 = vpop.f32.mrf.mxu1 }
 0xb19 PF: > { %s20_s30 = sadd.s32 1, %s1754_s30  }
 0xb1a   : > { %p17_p4 = scmp.ge.s32.totalorder %s20_s30, 4  }
 0xb1c   :  { %19 = sbr.rel (!%p17_p4) target bundleno = 1 (0x1), region = 105 }

// kernel: decoder_layer.5
= control target key start
LH: loop header
LB: loop body
LE: loop exit
PB: predicated region body
PF: predicated region fallthrough
CT: control target
= control target key end

     0   :  { %s1280_s0 = inlined_call_operand.vmem [shape: f32[16,32], index: 0, kind: input, shape index: {}]   ;;  %s1281_s1 = inlined_call_operand.vmem [shape: f32[16,32], index: 1, kind: input, shape index: {}]   ;;  %s1282_s2 = inlined_call_operand.vmem [shape: f32[4,16,3], index: 2, kind: input, shape index: {}]   ;;  %s1283_s3 = inlined_call_operand.vmem [shape: f32[4,32,128], index: 3, kind: input, shape index: {}]   ;;  %s1284_s4 = inlined_call_operand.vmem [shape: f32[4,64,32], index: 4, kind: input, shape index: {}]   ;;  %s1285_s5 = inlined_call_operand.hbm [shape: f32[16,32], index: 5, kind: output, shape index: {0}]   ;;  %s1286_s6 = inlined_call_operand.vmem [shape: f32[16,1], index: 6, kind: output, shape index: {1}]  }
   0x1   :  { %1297 = sst [smem:[#allocation17_spill]] %s1285_s5 }
   0x2   :  { %12 = vsyncpa [#allocation6], 0 }
   0x3   :  { %14 = vsyncpa [#allocation6 + $0x1], 0  ;;  %s1088_s21 = smov 0   ;;  %s1090_s22 = smov 0  }
   0x4   :  { %s1092_s23 = smov 0   ;;  %s1094_s24 = smov 0  }
   0x5   :  { %s1096_s25 = smov 0   ;;  %s1098_s26 = smov 0  }
   0x6   :  { %s1100_s27 = smov 0   ;;  %s1102_s28 = smov 0  }
   0x7 LB: > { %1298 = sst [smem:[#allocation8_spill]] %s1015_s21  ;;  %s789_s29 = sadd.s32 4294967295, %s1043_s28   ;;  %s1043_s28 = sphi %s1102_s28, %s20_s28   ;;  %s1039_s27 = sphi %s1100_s27, %s1320_s27   ;;  %s1035_s26 = sphi %s1098_s26, %s1319_s26   ;;  %s1031_s25 = sphi %s1096_s25, %s1318_s25   ;;  %s1027_s24 = sphi %s1094_s24, %s1317_s24   ;;  %s1023_s23 = sphi %s1092_s23, %s1316_s23   ;;  %s1019_s22 = sphi %s1090_s22, %s1322_s22   ;;  %s1015_s21 = sphi %s1088_s21, %s1321_s21  }
   0x8   : > { %1299 = sst [smem:[#allocation9_spill]] %s1023_s23  ;;  %s790_s30 = sadd.s32 4294967294, %s1043_s28  }
   0x9   : > { %1300 = sst [smem:[#allocation10_spill]] %s1035_s26  ;;  %s29_s7 = sadd.s32 1, %s1035_s26 }
   0xa   : > { %1301 = sst [smem:[#allocation11_spill]] %s1039_s27  ;;  %p30_p0 = scmp.ge.s32.totalorder %s29_s7, 4 }
   0xb   : > { %1302 = sst [smem:[#allocation12_spill]] %s1043_s28  ;;  %s32_s8 = sadd.s32 1, %s1039_s27 }
   0xc   : > { %p181_p1 = scmp.ne.s32.totalorder %s1023_s23, %s1019_s22  ;;  %p182_p2 = scmp.eq.s32.totalorder %s789_s29, 7 }
   0xd   : > { %s1324_s7 = smov (%p30_p0, %s29_s7), 0  ;;  %s1326_s8 = smov (!%p30_p0, %s32_s8), %s1039_s27 }
   0xe   : > { %1303 = sst [smem:[#allocation13_spill]] %s1324_s7  ;;  %p1137_p3 = por %p182_p2, %p181_p1 }
   0xf   : > { %p187_p4 = scmp.ne.s32.totalorder %s1019_s22, %s1015_s21  ;;  %p34_p5 = scmp.ge.s32.totalorder %s1326_s8, 2 }
  0x10   : > { %p188_p6 = scmp.eq.s32.totalorder %s790_s30, 7  ;;  %p793_p7 = scmp.ge.s32.totalorder %s1043_s28, 1 }
  0x11   : > { %p273_p8 = scmp.lt.s32.totalorder %s1043_s28, 9  ;;  %s1328_s8 = smov (%p34_p5, %s1326_s8), 0 }
  0x12   : > { %1305 = sst [smem:[#allocation14_spill]] %s1328_s8  ;;  %p1147_p9 = por %p188_p6, %p187_p4 }
  0x13   : > { %p274_p10 = pnand %p793_p7, %p273_p8  ;;  %s168_s11 = ssub.s32 %s1039_s27, %s1328_s8 }
  0x14   : > { %s1306_s10 = scalar_select %p1147_p9, 1, 0 }
  0x15   : > { %s171_s12 = sadd.s32 1, %s1023_s23  ;;  %p169_p11 = scmp.eq.s32.totalorder %s168_s11, 0 }
  0x16   : > { %1307 = sst [smem:[#allocation15_spill]] %s1306_s10  ;;  %277 = sbr.rel (%p274_p10) target bundleno = 919 (0x397), region = 40 }
  0x17   : > { %s1155_s13 = scalar_select %p169_p11, %s1023_s23, %s171_s12  }
  0x18   : > { %s1288_s14 = sand.u32 (!%p274_p10), 1, %s1019_s22   ;;  %p328_p12 = scmp.lt.s32.totalorder (!%p274_p10), %s1031_s25, 1 }
  0x19   : > { %1308 = sst [smem:[#allocation16_spill]] %s1155_s13  ;;  %s1161_s15 = sshll.u32 (!%p274_p10), %s1288_s14, 3 }
  0x1a   : > { %p336_p13 = scmp.lt.s32.totalorder (!%p274_p10), %s1027_s24, 3  ;;  %p804_p0 = scmp.ne.s32.totalorder (!%p274_p10), %s1027_s24, 0 }
  0x1b   : > { %s329_s16 = scalar_select %p328_p12, %s1031_s25, 1 }
  0x1c   : > { %s337_s17 = scalar_select %p336_p13, %s1027_s24, 3 }
  0x1d   : > { %s1166_s18 = sshll.u32 %s329_s16, 3 }
  0x1e   : > { %s335_s12 = scalar_lea.vmem %s1281_s1, %s1166_s18  ;;  %s797_s8 = sshll.u32 %s337_s17, 1 }
  0x1f   : > { %s813_s14 = sshll.u32 %s337_s17, 5  ;;  %s341_s7 = sadd.s32 %s797_s8, %s329_s16 }
  0x20   : > { %s348_s13 = scalar_lea.vmem %s1283_s3, %s813_s14  ;;  %s798_s23 = sshll.u32 %s341_s7, 3 }
  0x21   : > { %s814_s10 = sshll.u32 %s337_s17, 6  ;;  %s1182_s19 = scalar_lea.vmem %s1282_s2, %s798_s23 }
  0x22   : > { %s1187_s5 = scalar_lea.vmem %s1284_s4, %s814_s10  ;;  %s357_s8 = scalar_lea.vmem %s1286_s6, %s1166_s18 }
  0x23   : > { %s321_s16 = scalar_lea.vmem [#allocation5], %s1161_s15  ;;  %361 = sbr.rel (%p804_p0) target bundleno = 43 (0x2b), region = 44 }
  0x28   : > { %vm362_vm0 = vcmask 261120   ;;  %v1045_v0 = vmov 0.0  }
  0x29   : > { %363 = vst.msk [vmem:[#allocation2] sm:$0xff] %vm362_vm0, %v1045_v0  ;;  %364 = vst.msk [vmem:[#allocation3] sm:$0xff] %vm362_vm0, %v1045_v0 }
  0x2a   : > { %365 = vst.msk [vmem:[#allocation4] sm:$0xff] %vm362_vm0, %v1045_v0 }
  0x2b PF: > { %v370_v1 = vld [vmem:[%s348_s13 + $0x18] sm:$0xff]  ;;  %v1046_v2 = vmov 0.0   ;;  %v369_v3 = vld [vmem:[%s348_s13 + $0x10] sm:$0xff]  ;;  %vm1047_vm1 = vmmov 0   ;;  %v368_v4 = vld [vmem:[%s348_s13 + $0x8] sm:$0xff]  ;;  %s1309_s26 = scalar_lea.vmem %s1280_s0, %s1166_s18  ;;  %vm371_vm2 = vcmask 261120  }
  0x2c   : > { %829 = vmatprep.subr.mxu0 %v1046_v2  ;;  %837 = vmatprep.mubr.msk.f32.mxu0 %vm1047_vm1, %v1046_v2  ;;  %v367_v5 = vld [vmem:[%s348_s13] sm:$0xff]  ;;  %v464_v7 = vld [vmem:[%s1187_s5 + $0x38] sm:$0xff]  ;;  %v463_v8 = vld [vmem:[%s1187_s5 + $0x30] sm:$0xff]  ;;  %v1048_v16 = vmov 1   ;;  %v1049_v17 = vmov 0   ;;  %v1050_v18 = vmov 2  }
  0x2d   : > { %830 = vmatpush3.msra.mxu0 %v370_v1  ;;  %840 = vmatprep.subr.mxu1 %v1046_v2  ;;  %v366_v6 = vld [vmem:[%s1309_s26] sm:$0xff]  ;;  %v462_v9 = vld [vmem:[%s1187_s5 + $0x28] sm:$0xff]  ;;  %v460_v11 = vld [vmem:[%s1187_s5 + $0x18] sm:$0xff]  ;;  %s1051_s27 = smov 64   ;;  %vm465_vm3 = vcmask 523264   ;;  %p808_p1 = scmp.ne.s32.totalorder %s1027_s24, 3 }
  0x2e   : > { %831 = vmatprep.subr.mxu0 %v1046_v2  ;;  %856 = vmatprep.mubr.msk.f32.mxu1 %vm1047_vm1, %v1046_v2  ;;  %v461_v10 = vld [vmem:[%s1187_s5 + $0x20] sm:$0xff]  ;;  %v459_v12 = vld [vmem:[%s1187_s5 + $0x10] sm:$0xff]  ;;  %v458_v13 = vld [vmem:[%s1187_s5 + $0x8] sm:$0xff] }
  0x2f   : > { %832 = vmatpush3.msra.mxu0 %v369_v3  ;;  %841 = vmatpush3.msra.mxu1 %v464_v7  ;;  %v457_v14 = vld [vmem:[%s1187_s5] sm:$0xff] }
  0x30   : > { %833 = vmatprep.subr.mxu0 %v1046_v2  ;;  %842 = vmatprep.subr.mxu1 %v1046_v2  ;;  %v539_v15 = vld [vmem:[%s1182_s19] sm:$0xff]  ;;  %v549_v33 = vld [vmem:[#allocation3] sm:$0xff] }
  0x31   : > { %834 = vmatpush3.msra.mxu0 %v368_v4  ;;  %843 = vmatpush3.msra.mxu1 %v463_v8  ;;  %v540_v32 = vld [vmem:[#allocation2] sm:$0xff]  ;;  %v557_v34 = vld [vmem:[#allocation4] sm:$0xff] }
  0x32   : > { %835 = vmatprep.subr.mxu0 %v1046_v2  ;;  %844 = vmatprep.subr.mxu1 %v1046_v2 }
  0x33   : > { %836 = vmatpush3.msra.mxu0 %v367_v5  ;;  %845 = vmatpush3.msra.mxu1 %v462_v9 }
  0x34   : > { %838 = vmatmul.mubr.msk.f32.vlgmr.msra.gmra.mxu0 %vm371_vm2, %v366_v6  ;;  %846 = vmatprep.subr.mxu1 %v1046_v2 }
  0x35   : > { %847 = vmatpush3.msra.mxu1 %v461_v10  ;;  %938 = vset.pattern.permute.xlu1 %v1048_v16 }
  0x36   : > { %848 = vmatprep.subr.mxu1 %v1046_v2  ;;  %937 = vset.pattern.permute.xlu0 %v1049_v17 }
  0x37   : > { %849 = vmatpush3.msra.mxu1 %v460_v11  ;;  %551 = vperm.xlu1 %938, %v539_v15  }
  0x38   : > { %850 = vmatprep.subr.mxu1 %v1046_v2 }
  0x39   : > { %851 = vmatpush3.msra.mxu1 %v459_v12 }
  0x3a   : > { %852 = vmatprep.subr.mxu1 %v1046_v2 }
  0x3b   : > { %853 = vmatpush3.msra.mxu1 %v458_v13  ;;  %939 = vset.pattern.permute.xlu1 %v1050_v18 }
  0x3c   : > { %854 = vmatprep.subr.mxu1 %v1046_v2  ;;  %559 = vperm.xlu1 %939, %v539_v15  }
  0x3d   : > { %855 = vmatpush3.msra.mxu1 %v457_v14 }
  0xb2   : > { %v552_v28 = vpop.permute.xlu1 %551 }
  0xb7   : > { %v560_v29 = vpop.permute.xlu1 %559 }
  0xf4   : > { %v441_v19 = vpop.f32.mrf.mxu0 }
  0xf5   : > { %453 = vrot.lane.b32.xlu0 %v441_v19, %s1051_s27  ;;  %v806_v21 = vmul.f32 -1.442695, %v441_v19 }
  0xf6   : > { %v839_v20 = vpop.f32.mrf.mxu0 }
  0xf7   : > { %941 = vpow2.f32 %v806_v21 }
  0xf9   : > { %543 = vperm.xlu0 %937, %v539_v15  }
  0xfd   : > { %940 = vset.pattern.permute.xlu0 %v1050_v18 }
 0x104   : > { %v942_v22 = vpop.eup %941 }
 0x105   : > { %v448_v23 = vadd.f32 1.0, %v942_v22 }
 0x107   : > { %943 = vrcp.f32 %v448_v23 }
 0x114   : > { %v944_v24 = vpop.eup %943 }
 0x115   : > { %v451_v25 = vmul.f32 %v944_v24, %v441_v19 }
 0x167   : > { %v454_v26 = vpop.permute.xlu0 %453 }
 0x168   : > { %v456_v27 = vmul.f32 %v454_v26, %v451_v25 }
 0x16a   : > { %857 = vmatmul.mubr.msk.f32.vlgmr.msra.gmra.mxu1 %vm465_vm3, %v456_v27 }
 0x174   : > { %v544_v30 = vpop.permute.xlu0 %543 }
 0x22a   : > { %v535_v31 = vpop.f32.mrf.mxu1 }
 0x22b   : > { %v546_v35 = vmul.f32 %v544_v30, %v535_v31  ;;  %v554_v36 = vmul.f32 %v552_v28, %v535_v31  ;;  %v562_v37 = vmul.f32 %v560_v29, %v535_v31 }
 0x22c   : > { %v858_v38 = vpop.f32.mrf.mxu1  ;;  %568 = sbr.rel (%p808_p1) target bundleno = 894 (0x37e), region = 48 }
 0x22d   : > { %v547_v39 = vadd.f32 %v546_v35, %v540_v32  ;;  %v555_v40 = vadd.f32 %v554_v36, %v549_v33  ;;  %v563_v41 = vadd.f32 %v562_v37, %v557_v34 }
 0x22f   : > { %548 = vst.msk [vmem:[#allocation2] sm:$0xff] %vm371_vm2, %v547_v39  ;;  %556 = vst.msk [vmem:[#allocation3] sm:$0xff] %vm371_vm2, %v555_v40 }
 0x230   : > { %564 = vst.msk [vmem:[#allocation4] sm:$0xff] %vm371_vm2, %v563_v41 }
 0x231   : > { %v569_v58 = vld [vmem:[%s335_s12] sm:$0xff]  ;;  %vm618_vm8 = vcmask 7168  }
 0x236   : > { %v573_v42 = vld [vmem:[#allocation3] sm:$0xff]  ;;  %v570_v59 = vld [vmem:[#allocation2] sm:$0xff] }
 0x237   : > { %v574_v43 = vld [vmem:[#allocation4] sm:$0xff]  ;;  %v575_v44 = vsel %vm371_vm2, %v573_v42, 0.0  ;;  %v571_v60 = vadd.f32 %v570_v59, %v569_v58 }
 0x238   : > { %576 = vadd.xlane.f32.xlu0 %v575_v44  ;;  %v581_v45 = vsel %vm371_vm2, %v574_v43, 0.0 }
 0x239   : > { %572 = vst.msk [vmem:[%s321_s16] sm:$0xff] %vm371_vm2, %v571_v60 }
 0x23c   : > { %582 = vadd.xlane.f32.xlu0 %v581_v45 }
 0x2c1   : > { %v577_v46 = vpop.xlane.xlu0 %576 }
 0x2c2   : > { %v579_v47 = vmul.f32 0.03125, %v577_v46 }
 0x2c4   : > { %v580_v48 = vsub.f32 %v573_v42, %v579_v47 }
 0x2c5   : > { %v583_v49 = vpop.xlane.xlu0 %582 }
 0x2c6   : > { %v584_v50 = vmul.f32 0.03125, %v583_v49  ;;  %v586_v51 = vmul.f32 %v580_v48, %v580_v48 }
 0x2c8   : > { %v585_v52 = vsub.f32 %v574_v43, %v584_v50  ;;  %v587_v53 = vsel %vm371_vm2, %v586_v51, 0.0 }
 0x2c9   : > { %588 = vadd.xlane.f32.xlu1 %v587_v53 }
 0x2ca   : > { %v610_v54 = vmul.f32 %v585_v52, %v580_v48  ;;  %v598_v55 = vmul.f32 %v585_v52, %v585_v52 }
 0x2cc   : > { %v611_v56 = vsel %vm371_vm2, %v610_v54, 0.0  ;;  %v599_v57 = vsel %vm371_vm2, %v598_v55, 0.0 }
 0x2cd   : > { %612 = vadd.xlane.f32.xlu0 %v611_v56  ;;  %600 = vadd.xlane.f32.xlu1 %v599_v57 }
 0x352   : > { %v589_v61 = vpop.xlane.xlu1 %588 }
 0x353   : > { %v590_v62 = vmul.f32 0.03125, %v589_v61 }
 0x355   : > { %945 = vrsqrt.f32 %v590_v62  ;;  %vm593_vm4 = vcmp.eq.f32.partialorder %v590_v62, inf  ;;  %v596_v6 = vand.u32 2147483648, %v590_v62  ;;  %vm595_vm6 = vcmp.eq.f32.partialorder %v590_v62, 0.0 }
 0x356   : > { %v601_v63 = vpop.xlane.xlu1 %600  ;;  %v613_v12 = vpop.xlane.xlu0 %612 }
 0x357   : > { %v602_v0 = vmul.f32 0.03125, %v601_v63  ;;  %v614_v13 = vmul.f32 0.03125, %v613_v12 }
 0x359   : > { %947 = vrsqrt.f32 %v602_v0  ;;  %vm605_vm5 = vcmp.eq.f32.partialorder %v602_v0, inf  ;;  %v608_v7 = vand.u32 2147483648, %v602_v0  ;;  %vm607_vm7 = vcmp.eq.f32.partialorder %v602_v0, 0.0 }
 0x362   : > { %v946_v1 = vpop.eup %945 }
 0x363   : > { %v592_v2 = vmul.f32 %v946_v1, %v590_v62 }
 0x365   : > { %v594_v4 = vsel %vm593_vm4, %v590_v62, %v592_v2 }
 0x366   : > { %v948_v3 = vpop.eup %947  ;;  %v597_v9 = vsel %vm595_vm6, %v596_v6, %v594_v4 }
 0x367   : > { %v604_v5 = vmul.f32 %v948_v3, %v602_v0 }
 0x369   : > { %v606_v8 = vsel %vm605_vm5, %v602_v0, %v604_v5 }
 0x36a   : > { %v609_v10 = vsel %vm607_vm7, %v608_v7, %v606_v8 }
 0x36b   : > { %v615_v11 = vmul.f32 %v609_v10, %v597_v9 }
 0x36d   : > { %949 = vrcp.f32 %v615_v11 }
 0x37a   : > { %v950_v14 = vpop.eup %949 }
 0x37b   : > { %v617_v15 = vmul.f32 %v950_v14, %v614_v13 }
 0x37d   : > { %619 = vst.msk [vmem:[%s357_s8] sm:$0xff] %vm618_vm8, %v617_v15 }
 0x37e PF: > { %s810_s10 = sshll.u32 %s1031_s25, 7  ;;  %s1310_s17 = sld [smem:[#allocation17_spill]] }
 0x37f   : > { %s638_s12 = sshll.u32 %s321_s16, 4  ;;  %s1311_s19 = sand.u32 1, %s1019_s22   ;;  %s639_s12 = int_to_ptr.vmem [resolvable:$true] %s638_s12 }
 0x380   : > { %s621_s20 = scalar_lea.sflag [#allocation6], %s1311_s19  ;;  %s951_s30 = scalar_lea.vmem %s639_s12, 128 }
 0x381   : > { %p952_p2 = scmp.ne.s32.totalorder %s639_s12, %s951_s30  ;;  %s1052_s18 = smov [#allocation5]  }
 0x382   : > { %s955_s11 = sshll.u32 %s1052_s18, 4  ;;  %s956_s11 = int_to_ptr.vmem [resolvable:$false] %s955_s11 }
 0x383   : > { %p953_p4 = pnand %p952_p2, %p1137_p3  ;;  %s957_s8 = scalar_lea.vmem %s956_s11, 256 }
 0x384   : > { %s636_s29 = scalar_lea.hbm %s1310_s17, %s810_s10  ;;  %p958_p6 = scmp.lt.s32.totalorder %s639_s12, %s956_s11 }
 0x385   : > { %p954_p5 = pneg %p953_p4  ;;  %p959_p7 = scmp.lt.s32.totalorder %s957_s8, %s951_s30 }
 0x387   : > { %p960_p8 = por %p959_p7, %p958_p6 }
 0x389   : > { %p961_p10 = pnand %p960_p8, %p954_p5 }
 0x38b   : > { %964 = shalt.err (!%p961_p10)
}
 0x38c   : > { %s965_s25 = scalar_lea.hbm %s636_s29, 128  ;;  %s969_s21 = scalar_lea.hbm %s1310_s17, 256 }
 0x38d   : > { %p966_p11 = scmp.ne.s32.totalorder %s636_s29, %s965_s25  ;;  %p970_p0 = scmp.lt.s32.totalorder %s636_s29, %s1310_s17 }
 0x38e   : > { %p971_p1 = scmp.lt.s32.totalorder %s969_s21, %s965_s25 }
 0x38f   : > { %p967_p12 = pnand %p966_p11, %p1137_p3 }
 0x390   : > { %p972_p2 = por %p971_p1, %p970_p0 }
 0x391   : > { %p968_p13 = pneg %p967_p12 }
 0x393   : > { %p973_p4 = pnand %p972_p2, %p968_p13 }
 0x395   : > { %976 = shalt.err (!%p973_p4)
}
 0x396   : > { %859 = dma.vmem_to_hbm [thread:$0]  (%p1137_p3), %s639_s12, 128, %s636_s29, %s621_s20  }
 0x397 PF: > { %s1312_s27 = sld [smem:[#allocation12_spill]] }
 0x398   : > { %s1313_s5 = sld [smem:[#allocation8_spill]] }
 0x39d   : > { %p865_p5 = scmp.ge.s32.totalorder %s1312_s27, 2 }
 0x39e   : > { %s653_s28 = sand.u32 1, %s1313_s5  }
 0x39f   : > { %p862_p6 = pnand %p865_p5, %p1147_p9  ;;  %s654_s7 = scalar_lea.sflag [#allocation6], %s653_s28 }
 0x3a1   : > { %p863_p7 = pneg %p862_p6 }
 0x3a3   : > { %1010 = dma.done.wait (%p863_p7), %s654_s7, 128  }
 0x3a4   : > { %1012 = vsyncadd (%p863_p7), %s654_s7, 4294967168  ;;  %s20_s28 = sadd.s32 1, %s1312_s27   ;;  %s1315_s10 = sld [smem:[#allocation9_spill]] }
 0x3a5   : > { %p17_p8 = scmp.ge.s32.totalorder %s20_s28, 10   ;;  %s1316_s23 = sld [smem:[#allocation16_spill]] }
 0x3a6   : > { %s1317_s24 = sld [smem:[#allocation10_spill]]  ;;  %s1321_s21 = smov %s1019_s22 }
 0x3a7   : > { %s1318_s25 = sld [smem:[#allocation11_spill]]  ;;  %19 = sbr.rel (!%p17_p8) target bundleno = 7 (0x7), region = 107 }
 0x3a8   : > { %s1319_s26 = sld [smem:[#allocation13_spill]] }
 0x3a9   : > { %s1320_s27 = sld [smem:[#allocation14_spill]] }
 0x3aa   : > { %s1322_s22 = smov %s1315_s10 }
 0x3ac   :  { %666 = vsyncpa [#allocation6], 1 }
 0x3ad   :  { %668 = vsyncpa [#allocation6 + $0x1], 1 }

</bundles_post_ra>
